<compile_context>
chip_gen: v7x
topology: tpu7x:2x2x1
jax: 0.10.0
libtpu: 0.0.40
codegen_flags: <defaults>
</compile_context>

<pallas_src>
import functools
import math

import jax
import jax.numpy as jnp
from jax import lax
from jax.experimental import pallas as pl
from jax.experimental.pallas import tpu as pltpu


# ------------------------------------------------------------------ helpers --

def _layernorm(z, gamma, beta, eps=1e-5):
    # PyTorch nn.LayerNorm semantics (eps=1e-5, biased variance, last dim).  z is f32.
    mu = jnp.mean(z, axis=-1, keepdims=True)
    zc = z - mu
    var = jnp.mean(zc * zc, axis=-1, keepdims=True)
    return zc * lax.rsqrt(var + eps) * gamma + beta


def _contract_nk(x, w):
    # x: (M, K) @ w: (N, K) [torch Linear layout] -> (M, N).
    # Contract on the shared K dim directly; no transpose ever materialized.
    return lax.dot_general(x, w, (((1,), (1,)), ((), ())),
                           preferred_element_type=jnp.float32)


# ------------------------------------------------------------------- kernel --

def _encoder_kernel(x_ref,
                    wqkv_ref, bqkv_ref, wo_ref, bo_ref,
                    w1_ref, b1_ref, w2_ref, b2_ref,
                    g1_ref, bt1_ref, g2_ref, bt2_ref,
                    o_ref, *, num_layers, nhead, scale):
    S, D = x_ref.shape                                        # batch dim squeezed away
    hd = D // nhead

    x = x_ref[...].astype(jnp.float32)                        # (S, D), stays resident

    for l in range(num_layers):                               # static unroll (L small)
        wqkv = wqkv_ref[l].astype(jnp.float32)                # (3D, D)
        bqkv = bqkv_ref[l].astype(jnp.float32)                # (1, 3D)
        wo   = wo_ref[l].astype(jnp.float32)                  # (D, D)
        bo   = bo_ref[l].astype(jnp.float32)                  # (1, D)
        w1   = w1_ref[l].astype(jnp.float32)                  # (F, D)
        b1   = b1_ref[l].astype(jnp.float32)                  # (1, F)
        w2   = w2_ref[l].astype(jnp.float32)                  # (D, F)
        b2   = b2_ref[l].astype(jnp.float32)                  # (1, D)
        g1, bt1 = g1_ref[l].astype(jnp.float32), bt1_ref[l].astype(jnp.float32)
        g2, bt2 = g2_ref[l].astype(jnp.float32), bt2_ref[l].astype(jnp.float32)

        # --- self attention (q = k = v = x) -------------------------------
        qkv = _contract_nk(x, wqkv) + bqkv                    # (S, 3D)

        attn = jnp.zeros((S, D), jnp.float32)
        for h in range(nhead):                                # static unroll over heads
            lo = h * hd
            q = qkv[:, lo:lo + hd] * scale                    # (S, hd)
            k = qkv[:, D + lo:D + lo + hd]                    # (S, hd)
            v = qkv[:, 2 * D + lo:2 * D + lo + hd]            # (S, hd)

            s = _contract_nk(q, k)                            # (S, S), no k.T
            m = jnp.max(s, axis=-1, keepdims=True)
            p = jnp.exp(s - m)
            denom = jnp.sum(p, axis=-1, keepdims=True)        # (S, 1)
            oh = jnp.dot(p, v, preferred_element_type=jnp.float32)   # (S, hd)
            # Normalize the small (S, hd) accumulator, not the (S, S) matrix;
            # approx reciprocal runs on the EUP slot (near-free).
            oh = oh * pl.reciprocal(denom, approx=True)

            # Fused out-projection slice for this head: no concat / no transpose.
            attn = attn + _contract_nk(oh, wo[:, lo:lo + hd]) # (S, D)
        attn = attn + bo

        # residual + LayerNorm1 (dropout1 == identity in eval mode)
        x = _layernorm(x + attn, g1, bt1)

        # --- feedforward + residual + LayerNorm2 --------------------------
        hmid = jnp.maximum(_contract_nk(x, w1) + b1, 0.0)     # (S, F) relu
        ff = _contract_nk(hmid, w2) + b2                      # (S, D)
        x = _layernorm(x + ff, g2, bt2)

    o_ref[...] = x.astype(o_ref.dtype)


# ------------------------------------------------------------------ wrapper --

def transformer_encoder_forward(x, params, nhead):
    """x: (B, S, D); params: dict of layer-stacked weights (leading dim = num_layers)."""
    B, S, D = x.shape
    L = params["in_proj_w"].shape[0]
    hd = D // nhead

    weights = (params["in_proj_w"], params["in_proj_b"],
               params["out_proj_w"], params["out_proj_b"],
               params["lin1_w"], params["lin1_b"],
               params["lin2_w"], params["lin2_b"],
               params["ln1_g"], params["ln1_b"],
               params["ln2_g"], params["ln2_b"])

    def resident(a):
        # full-array block + constant index map -> DMA'd once, resident across the grid.
        nd = a.ndim
        return pl.BlockSpec(a.shape, lambda b, _nd=nd: (0,) * _nd)

    kernel = functools.partial(_encoder_kernel, num_layers=L, nhead=nhead,
                               scale=1.0 / math.sqrt(hd))

    # Batch dim squeezed: kernel sees (S, D) refs directly.
    act_spec = pl.BlockSpec((None, S, D), lambda b: (b, 0, 0))

    return pl.pallas_call(
        kernel,
        out_shape=jax.ShapeDtypeStruct((B, S, D), x.dtype),
        grid=(B,),
        in_specs=[act_spec] + [resident(w) for w in weights],
        out_specs=act_spec,
        compiler_params=pltpu.CompilerParams(
            # batch axis shards across TensorCores on v7x; harmless elsewhere.
            dimension_semantics=("parallel",)),
    )(x, *weights)


def init_params(key, num_layers, d_model, dim_feedforward):
    """Layer-stacked params in torch Linear (out, in) layout; biases pre-shaped (1, N)."""
    def one(k):
        k0, k1, k2, k3 = jax.random.split(k, 4)
        return {
            "in_proj_w": 0.02 * jax.random.normal(k0, (3 * d_model, d_model), jnp.float32),
            "in_proj_b": jnp.zeros((1, 3 * d_model), jnp.float32),
            "out_proj_w": 0.02 * jax.random.normal(k1, (d_model, d_model), jnp.float32),
            "out_proj_b": jnp.zeros((1, d_model), jnp.float32),
            "lin1_w": 0.02 * jax.random.normal(k2, (dim_feedforward, d_model), jnp.float32),
            "lin1_b": jnp.zeros((1, dim_feedforward), jnp.float32),
            "lin2_w": 0.02 * jax.random.normal(k3, (d_model, dim_feedforward), jnp.float32),
            "lin2_b": jnp.zeros((1, d_model), jnp.float32),
            "ln1_g": jnp.ones((1, d_model), jnp.float32),
            "ln1_b": jnp.zeros((1, d_model), jnp.float32),
            "ln2_g": jnp.ones((1, d_model), jnp.float32),
            "ln2_b": jnp.zeros((1, d_model), jnp.float32),
        }
    layers = [one(k) for k in jax.random.split(key, num_layers)]
    return {name: jnp.stack([lp[name] for lp in layers]) for name in layers[0]}


# --------------------------------------------------------------------- main --

if __name__ == "__main__":
    num_layers, d_model, nhead, dim_ff = 2, 32, 4, 64
    B, S = 2, 8

    key = jax.random.PRNGKey(0)
    key, pkey, xkey = jax.random.split(key, 3)
    params = init_params(pkey, num_layers, d_model, dim_ff)
    x = jax.random.normal(xkey, (B, S, d_model), jnp.float32)

    fwd = jax.jit(transformer_encoder_forward, static_argnums=2)
    out = fwd(x, params, nhead)
    out = jax.block_until_ready(out)

    assert out.shape == (B, S, d_model) and out.dtype == jnp.float32
    assert bool(jnp.all(jnp.isfinite(out)))
    print("KERNEL_OK")
</pallas_src>

<mosaic_0001>
module attributes {stable_mosaic.version = 11 : i64} {
  func.func @_encoder_kernel(%arg0: i32, %arg1: memref<1x8x32xf32, #tpu.memory_space<vmem>>, %arg2: memref<2x96x32xf32, #tpu.memory_space<vmem>>, %arg3: memref<2x1x96xf32, #tpu.memory_space<vmem>>, %arg4: memref<2x32x32xf32, #tpu.memory_space<vmem>>, %arg5: memref<2x1x32xf32, #tpu.memory_space<vmem>>, %arg6: memref<2x64x32xf32, #tpu.memory_space<vmem>>, %arg7: memref<2x1x64xf32, #tpu.memory_space<vmem>>, %arg8: memref<2x32x64xf32, #tpu.memory_space<vmem>>, %arg9: memref<2x1x32xf32, #tpu.memory_space<vmem>>, %arg10: memref<2x1x32xf32, #tpu.memory_space<vmem>>, %arg11: memref<2x1x32xf32, #tpu.memory_space<vmem>>, %arg12: memref<2x1x32xf32, #tpu.memory_space<vmem>>, %arg13: memref<2x1x32xf32, #tpu.memory_space<vmem>>, %arg14: memref<1x8x32xf32, #tpu.memory_space<vmem>>) attributes {dimension_semantics = [#tpu.dimension_semantics<parallel>], iteration_bounds = array<i64: 2>, scalar_prefetch = 0 : i64, scratch_operands = 0 : i64, tpu.core_type = #tpu.core_type<tc>, window_params = [{transform_indices = @transform_0, window_bounds = array<i64: 1, 8, 32>}, {pipeline_mode = #tpu.pipeline_mode<synchronous>, transform_indices = @transform_1, window_bounds = array<i64: 2, 96, 32>}, {pipeline_mode = #tpu.pipeline_mode<synchronous>, transform_indices = @transform_2, window_bounds = array<i64: 2, 1, 96>}, {pipeline_mode = #tpu.pipeline_mode<synchronous>, transform_indices = @transform_3, window_bounds = array<i64: 2, 32, 32>}, {pipeline_mode = #tpu.pipeline_mode<synchronous>, transform_indices = @transform_4, window_bounds = array<i64: 2, 1, 32>}, {pipeline_mode = #tpu.pipeline_mode<synchronous>, transform_indices = @transform_5, window_bounds = array<i64: 2, 64, 32>}, {pipeline_mode = #tpu.pipeline_mode<synchronous>, transform_indices = @transform_6, window_bounds = array<i64: 2, 1, 64>}, {pipeline_mode = #tpu.pipeline_mode<synchronous>, transform_indices = @transform_7, window_bounds = array<i64: 2, 32, 64>}, {pipeline_mode = #tpu.pipeline_mode<synchronous>, transform_indices = @transform_8, window_bounds = array<i64: 2, 1, 32>}, {pipeline_mode = #tpu.pipeline_mode<synchronous>, transform_indices = @transform_9, window_bounds = array<i64: 2, 1, 32>}, {pipeline_mode = #tpu.pipeline_mode<synchronous>, transform_indices = @transform_10, window_bounds = array<i64: 2, 1, 32>}, {pipeline_mode = #tpu.pipeline_mode<synchronous>, transform_indices = @transform_11, window_bounds = array<i64: 2, 1, 32>}, {pipeline_mode = #tpu.pipeline_mode<synchronous>, transform_indices = @transform_12, window_bounds = array<i64: 2, 1, 32>}, {transform_indices = @transform_13, window_bounds = array<i64: 1, 8, 32>}]} {
    %c0 = arith.constant 0 : index
    %c0_0 = arith.constant 0 : index
    %c0_1 = arith.constant 0 : index
    %0 = vector.load %arg1[%c0, %c0_0, %c0_1] : memref<1x8x32xf32, #tpu.memory_space<vmem>>, vector<1x8x32xf32>
    %1 = vector.shape_cast %0 : vector<1x8x32xf32> to vector<8x32xf32>
    %c0_2 = arith.constant 0 : index
    %c0_3 = arith.constant 0 : index
    %c0_4 = arith.constant 0 : index
    %2 = vector.load %arg2[%c0_2, %c0_3, %c0_4] : memref<2x96x32xf32, #tpu.memory_space<vmem>>, vector<1x96x32xf32>
    %3 = vector.shape_cast %2 : vector<1x96x32xf32> to vector<96x32xf32>
    %c0_5 = arith.constant 0 : index
    %c0_6 = arith.constant 0 : index
    %c0_7 = arith.constant 0 : index
    %4 = vector.load %arg3[%c0_5, %c0_6, %c0_7] : memref<2x1x96xf32, #tpu.memory_space<vmem>>, vector<1x1x96xf32>
    %5 = vector.shape_cast %4 : vector<1x1x96xf32> to vector<1x96xf32>
    %c0_8 = arith.constant 0 : index
    %c0_9 = arith.constant 0 : index
    %c0_10 = arith.constant 0 : index
    %6 = vector.load %arg4[%c0_8, %c0_9, %c0_10] : memref<2x32x32xf32, #tpu.memory_space<vmem>>, vector<1x32x32xf32>
    %7 = vector.shape_cast %6 : vector<1x32x32xf32> to vector<32x32xf32>
    %c0_11 = arith.constant 0 : index
    %c0_12 = arith.constant 0 : index
    %c0_13 = arith.constant 0 : index
    %8 = vector.load %arg5[%c0_11, %c0_12, %c0_13] : memref<2x1x32xf32, #tpu.memory_space<vmem>>, vector<1x1x32xf32>
    %9 = vector.shape_cast %8 : vector<1x1x32xf32> to vector<1x32xf32>
    %c0_14 = arith.constant 0 : index
    %c0_15 = arith.constant 0 : index
    %c0_16 = arith.constant 0 : index
    %10 = vector.load %arg6[%c0_14, %c0_15, %c0_16] : memref<2x64x32xf32, #tpu.memory_space<vmem>>, vector<1x64x32xf32>
    %11 = vector.shape_cast %10 : vector<1x64x32xf32> to vector<64x32xf32>
    %c0_17 = arith.constant 0 : index
    %c0_18 = arith.constant 0 : index
    %c0_19 = arith.constant 0 : index
    %12 = vector.load %arg7[%c0_17, %c0_18, %c0_19] : memref<2x1x64xf32, #tpu.memory_space<vmem>>, vector<1x1x64xf32>
    %13 = vector.shape_cast %12 : vector<1x1x64xf32> to vector<1x64xf32>
    %c0_20 = arith.constant 0 : index
    %c0_21 = arith.constant 0 : index
    %c0_22 = arith.constant 0 : index
    %14 = vector.load %arg8[%c0_20, %c0_21, %c0_22] : memref<2x32x64xf32, #tpu.memory_space<vmem>>, vector<1x32x64xf32>
    %15 = vector.shape_cast %14 : vector<1x32x64xf32> to vector<32x64xf32>
    %c0_23 = arith.constant 0 : index
    %c0_24 = arith.constant 0 : index
    %c0_25 = arith.constant 0 : index
    %16 = vector.load %arg9[%c0_23, %c0_24, %c0_25] : memref<2x1x32xf32, #tpu.memory_space<vmem>>, vector<1x1x32xf32>
    %17 = vector.shape_cast %16 : vector<1x1x32xf32> to vector<1x32xf32>
    %c0_26 = arith.constant 0 : index
    %c0_27 = arith.constant 0 : index
    %c0_28 = arith.constant 0 : index
    %18 = vector.load %arg10[%c0_26, %c0_27, %c0_28] : memref<2x1x32xf32, #tpu.memory_space<vmem>>, vector<1x1x32xf32>
    %19 = vector.shape_cast %18 : vector<1x1x32xf32> to vector<1x32xf32>
    %c0_29 = arith.constant 0 : index
    %c0_30 = arith.constant 0 : index
    %c0_31 = arith.constant 0 : index
    %20 = vector.load %arg11[%c0_29, %c0_30, %c0_31] : memref<2x1x32xf32, #tpu.memory_space<vmem>>, vector<1x1x32xf32>
    %21 = vector.shape_cast %20 : vector<1x1x32xf32> to vector<1x32xf32>
    %c0_32 = arith.constant 0 : index
    %c0_33 = arith.constant 0 : index
    %c0_34 = arith.constant 0 : index
    %22 = vector.load %arg12[%c0_32, %c0_33, %c0_34] : memref<2x1x32xf32, #tpu.memory_space<vmem>>, vector<1x1x32xf32>
    %23 = vector.shape_cast %22 : vector<1x1x32xf32> to vector<1x32xf32>
    %c0_35 = arith.constant 0 : index
    %c0_36 = arith.constant 0 : index
    %c0_37 = arith.constant 0 : index
    %24 = vector.load %arg13[%c0_35, %c0_36, %c0_37] : memref<2x1x32xf32, #tpu.memory_space<vmem>>, vector<1x1x32xf32>
    %25 = vector.shape_cast %24 : vector<1x1x32xf32> to vector<1x32xf32>
    %cst = arith.constant dense<0.000000e+00> : vector<8x96xf32>
    %26 = tpu.matmul %1, %3, %cst {dimension_numbers = #tpu.dot_dimension_numbers<[1], [1], [0], [0], [0, 0, 1, 0], [], []>} : vector<8x32xf32>, vector<96x32xf32>, vector<8x96xf32> -> vector<8x96xf32>
    %27 = vector.broadcast %5 : vector<1x96xf32> to vector<8x96xf32>
    %28 = arith.addf %26, %27 : vector<8x96xf32>
    %cst_38 = arith.constant 0.000000e+00 : f32
    %29 = vector.broadcast %cst_38 : f32 to vector<8x32xf32>
    %30 = vector.extract_strided_slice %28 {offsets = [0, 0], sizes = [8, 8], strides = [1, 1]} : vector<8x96xf32> to vector<8x8xf32>
    %cst_39 = arith.constant 0.353553385 : f32
    %31 = vector.broadcast %cst_39 : f32 to vector<8x8xf32>
    %32 = arith.mulf %30, %31 : vector<8x8xf32>
    %33 = vector.extract_strided_slice %28 {offsets = [0, 32], sizes = [8, 8], strides = [1, 1]} : vector<8x96xf32> to vector<8x8xf32>
    %34 = vector.extract_strided_slice %28 {offsets = [0, 64], sizes = [8, 8], strides = [1, 1]} : vector<8x96xf32> to vector<8x8xf32>
    %cst_40 = arith.constant dense<0.000000e+00> : vector<8x8xf32>
    %35 = tpu.matmul %32, %33, %cst_40 {dimension_numbers = #tpu.dot_dimension_numbers<[1], [1], [0], [0], [0, 0, 1, 0], [], []>} : vector<8x8xf32>, vector<8x8xf32>, vector<8x8xf32> -> vector<8x8xf32>
    %cst_41 = arith.constant dense<0xFF800000> : vector<8xf32>
    %36 = vector.multi_reduction <maximumf>, %35, %cst_41 [1] : vector<8x8xf32> to vector<8xf32>
    %37 = vector.shape_cast %36 : vector<8xf32> to vector<8x1xf32>
    %38 = vector.broadcast %37 : vector<8x1xf32> to vector<8x8xf32>
    %39 = arith.subf %35, %38 : vector<8x8xf32>
    %40 = math.exp %39 : vector<8x8xf32>
    %cst_42 = arith.constant dense<0.000000e+00> : vector<8xf32>
    %41 = vector.multi_reduction <add>, %40, %cst_42 [1] : vector<8x8xf32> to vector<8xf32>
    %42 = vector.shape_cast %41 : vector<8xf32> to vector<8x1xf32>
    %cst_43 = arith.constant dense<0.000000e+00> : vector<8x8xf32>
    %43 = tpu.matmul %40, %34, %cst_43 {dimension_numbers = #tpu.dot_dimension_numbers<[1], [0], [0], [1], [0, 0, 1, 1], [], []>} : vector<8x8xf32>, vector<8x8xf32>, vector<8x8xf32> -> vector<8x8xf32>
    %44 = tpu.reciprocal %42 {approx = true} : vector<8x1xf32> -> vector<8x1xf32>
    %45 = vector.broadcast %44 : vector<8x1xf32> to vector<8x8xf32>
    %46 = arith.mulf %43, %45 : vector<8x8xf32>
    %47 = vector.extract_strided_slice %7 {offsets = [0, 0], sizes = [32, 8], strides = [1, 1]} : vector<32x32xf32> to vector<32x8xf32>
    %cst_44 = arith.constant dense<0.000000e+00> : vector<8x32xf32>
    %48 = tpu.matmul %46, %47, %cst_44 {dimension_numbers = #tpu.dot_dimension_numbers<[1], [1], [0], [0], [0, 0, 1, 0], [], []>} : vector<8x8xf32>, vector<32x8xf32>, vector<8x32xf32> -> vector<8x32xf32>
    %49 = arith.addf %29, %48 : vector<8x32xf32>
    %50 = vector.extract_strided_slice %28 {offsets = [0, 8], sizes = [8, 8], strides = [1, 1]} : vector<8x96xf32> to vector<8x8xf32>
    %cst_45 = arith.constant 0.353553385 : f32
    %51 = vector.broadcast %cst_45 : f32 to vector<8x8xf32>
    %52 = arith.mulf %50, %51 : vector<8x8xf32>
    %53 = vector.extract_strided_slice %28 {offsets = [0, 40], sizes = [8, 8], strides = [1, 1]} : vector<8x96xf32> to vector<8x8xf32>
    %54 = vector.extract_strided_slice %28 {offsets = [0, 72], sizes = [8, 8], strides = [1, 1]} : vector<8x96xf32> to vector<8x8xf32>
    %cst_46 = arith.constant dense<0.000000e+00> : vector<8x8xf32>
    %55 = tpu.matmul %52, %53, %cst_46 {dimension_numbers = #tpu.dot_dimension_numbers<[1], [1], [0], [0], [0, 0, 1, 0], [], []>} : vector<8x8xf32>, vector<8x8xf32>, vector<8x8xf32> -> vector<8x8xf32>
    %cst_47 = arith.constant dense<0xFF800000> : vector<8xf32>
    %56 = vector.multi_reduction <maximumf>, %55, %cst_47 [1] : vector<8x8xf32> to vector<8xf32>
    %57 = vector.shape_cast %56 : vector<8xf32> to vector<8x1xf32>
    %58 = vector.broadcast %57 : vector<8x1xf32> to vector<8x8xf32>
    %59 = arith.subf %55, %58 : vector<8x8xf32>
    %60 = math.exp %59 : vector<8x8xf32>
    %cst_48 = arith.constant dense<0.000000e+00> : vector<8xf32>
    %61 = vector.multi_reduction <add>, %60, %cst_48 [1] : vector<8x8xf32> to vector<8xf32>
    %62 = vector.shape_cast %61 : vector<8xf32> to vector<8x1xf32>
    %cst_49 = arith.constant dense<0.000000e+00> : vector<8x8xf32>
    %63 = tpu.matmul %60, %54, %cst_49 {dimension_numbers = #tpu.dot_dimension_numbers<[1], [0], [0], [1], [0, 0, 1, 1], [], []>} : vector<8x8xf32>, vector<8x8xf32>, vector<8x8xf32> -> vector<8x8xf32>
    %64 = tpu.reciprocal %62 {approx = true} : vector<8x1xf32> -> vector<8x1xf32>
    %65 = vector.broadcast %64 : vector<8x1xf32> to vector<8x8xf32>
    %66 = arith.mulf %63, %65 : vector<8x8xf32>
    %67 = vector.extract_strided_slice %7 {offsets = [0, 8], sizes = [32, 8], strides = [1, 1]} : vector<32x32xf32> to vector<32x8xf32>
    %cst_50 = arith.constant dense<0.000000e+00> : vector<8x32xf32>
    %68 = tpu.matmul %66, %67, %cst_50 {dimension_numbers = #tpu.dot_dimension_numbers<[1], [1], [0], [0], [0, 0, 1, 0], [], []>} : vector<8x8xf32>, vector<32x8xf32>, vector<8x32xf32> -> vector<8x32xf32>
    %69 = arith.addf %49, %68 : vector<8x32xf32>
    %70 = vector.extract_strided_slice %28 {offsets = [0, 16], sizes = [8, 8], strides = [1, 1]} : vector<8x96xf32> to vector<8x8xf32>
    %cst_51 = arith.constant 0.353553385 : f32
    %71 = vector.broadcast %cst_51 : f32 to vector<8x8xf32>
    %72 = arith.mulf %70, %71 : vector<8x8xf32>
    %73 = vector.extract_strided_slice %28 {offsets = [0, 48], sizes = [8, 8], strides = [1, 1]} : vector<8x96xf32> to vector<8x8xf32>
    %74 = vector.extract_strided_slice %28 {offsets = [0, 80], sizes = [8, 8], strides = [1, 1]} : vector<8x96xf32> to vector<8x8xf32>
    %cst_52 = arith.constant dense<0.000000e+00> : vector<8x8xf32>
    %75 = tpu.matmul %72, %73, %cst_52 {dimension_numbers = #tpu.dot_dimension_numbers<[1], [1], [0], [0], [0, 0, 1, 0], [], []>} : vector<8x8xf32>, vector<8x8xf32>, vector<8x8xf32> -> vector<8x8xf32>
    %cst_53 = arith.constant dense<0xFF800000> : vector<8xf32>
    %76 = vector.multi_reduction <maximumf>, %75, %cst_53 [1] : vector<8x8xf32> to vector<8xf32>
    %77 = vector.shape_cast %76 : vector<8xf32> to vector<8x1xf32>
    %78 = vector.broadcast %77 : vector<8x1xf32> to vector<8x8xf32>
    %79 = arith.subf %75, %78 : vector<8x8xf32>
    %80 = math.exp %79 : vector<8x8xf32>
    %cst_54 = arith.constant dense<0.000000e+00> : vector<8xf32>
    %81 = vector.multi_reduction <add>, %80, %cst_54 [1] : vector<8x8xf32> to vector<8xf32>
    %82 = vector.shape_cast %81 : vector<8xf32> to vector<8x1xf32>
    %cst_55 = arith.constant dense<0.000000e+00> : vector<8x8xf32>
    %83 = tpu.matmul %80, %74, %cst_55 {dimension_numbers = #tpu.dot_dimension_numbers<[1], [0], [0], [1], [0, 0, 1, 1], [], []>} : vector<8x8xf32>, vector<8x8xf32>, vector<8x8xf32> -> vector<8x8xf32>
    %84 = tpu.reciprocal %82 {approx = true} : vector<8x1xf32> -> vector<8x1xf32>
    %85 = vector.broadcast %84 : vector<8x1xf32> to vector<8x8xf32>
    %86 = arith.mulf %83, %85 : vector<8x8xf32>
    %87 = vector.extract_strided_slice %7 {offsets = [0, 16], sizes = [32, 8], strides = [1, 1]} : vector<32x32xf32> to vector<32x8xf32>
    %cst_56 = arith.constant dense<0.000000e+00> : vector<8x32xf32>
    %88 = tpu.matmul %86, %87, %cst_56 {dimension_numbers = #tpu.dot_dimension_numbers<[1], [1], [0], [0], [0, 0, 1, 0], [], []>} : vector<8x8xf32>, vector<32x8xf32>, vector<8x32xf32> -> vector<8x32xf32>
    %89 = arith.addf %69, %88 : vector<8x32xf32>
    %90 = vector.extract_strided_slice %28 {offsets = [0, 24], sizes = [8, 8], strides = [1, 1]} : vector<8x96xf32> to vector<8x8xf32>
    %cst_57 = arith.constant 0.353553385 : f32
    %91 = vector.broadcast %cst_57 : f32 to vector<8x8xf32>
    %92 = arith.mulf %90, %91 : vector<8x8xf32>
    %93 = vector.extract_strided_slice %28 {offsets = [0, 56], sizes = [8, 8], strides = [1, 1]} : vector<8x96xf32> to vector<8x8xf32>
    %94 = vector.extract_strided_slice %28 {offsets = [0, 88], sizes = [8, 8], strides = [1, 1]} : vector<8x96xf32> to vector<8x8xf32>
    %cst_58 = arith.constant dense<0.000000e+00> : vector<8x8xf32>
    %95 = tpu.matmul %92, %93, %cst_58 {dimension_numbers = #tpu.dot_dimension_numbers<[1], [1], [0], [0], [0, 0, 1, 0], [], []>} : vector<8x8xf32>, vector<8x8xf32>, vector<8x8xf32> -> vector<8x8xf32>
    %cst_59 = arith.constant dense<0xFF800000> : vector<8xf32>
    %96 = vector.multi_reduction <maximumf>, %95, %cst_59 [1] : vector<8x8xf32> to vector<8xf32>
    %97 = vector.shape_cast %96 : vector<8xf32> to vector<8x1xf32>
    %98 = vector.broadcast %97 : vector<8x1xf32> to vector<8x8xf32>
    %99 = arith.subf %95, %98 : vector<8x8xf32>
    %100 = math.exp %99 : vector<8x8xf32>
    %cst_60 = arith.constant dense<0.000000e+00> : vector<8xf32>
    %101 = vector.multi_reduction <add>, %100, %cst_60 [1] : vector<8x8xf32> to vector<8xf32>
    %102 = vector.shape_cast %101 : vector<8xf32> to vector<8x1xf32>
    %cst_61 = arith.constant dense<0.000000e+00> : vector<8x8xf32>
    %103 = tpu.matmul %100, %94, %cst_61 {dimension_numbers = #tpu.dot_dimension_numbers<[1], [0], [0], [1], [0, 0, 1, 1], [], []>} : vector<8x8xf32>, vector<8x8xf32>, vector<8x8xf32> -> vector<8x8xf32>
    %104 = tpu.reciprocal %102 {approx = true} : vector<8x1xf32> -> vector<8x1xf32>
    %105 = vector.broadcast %104 : vector<8x1xf32> to vector<8x8xf32>
    %106 = arith.mulf %103, %105 : vector<8x8xf32>
    %107 = vector.extract_strided_slice %7 {offsets = [0, 24], sizes = [32, 8], strides = [1, 1]} : vector<32x32xf32> to vector<32x8xf32>
    %cst_62 = arith.constant dense<0.000000e+00> : vector<8x32xf32>
    %108 = tpu.matmul %106, %107, %cst_62 {dimension_numbers = #tpu.dot_dimension_numbers<[1], [1], [0], [0], [0, 0, 1, 0], [], []>} : vector<8x8xf32>, vector<32x8xf32>, vector<8x32xf32> -> vector<8x32xf32>
    %109 = arith.addf %89, %108 : vector<8x32xf32>
    %110 = vector.broadcast %9 : vector<1x32xf32> to vector<8x32xf32>
    %111 = arith.addf %109, %110 : vector<8x32xf32>
    %112 = arith.addf %1, %111 : vector<8x32xf32>
    %cst_63 = arith.constant dense<0.000000e+00> : vector<8xf32>
    %113 = vector.multi_reduction <add>, %112, %cst_63 [1] : vector<8x32xf32> to vector<8xf32>
    %114 = vector.shape_cast %113 : vector<8xf32> to vector<8x1xf32>
    %cst_64 = arith.constant 3.200000e+01 : f32
    %115 = vector.broadcast %cst_64 : f32 to vector<8x1xf32>
    %116 = arith.divf %114, %115 : vector<8x1xf32>
    %117 = vector.broadcast %116 : vector<8x1xf32> to vector<8x32xf32>
    %118 = arith.subf %112, %117 : vector<8x32xf32>
    %119 = arith.mulf %118, %118 : vector<8x32xf32>
    %cst_65 = arith.constant dense<0.000000e+00> : vector<8xf32>
    %120 = vector.multi_reduction <add>, %119, %cst_65 [1] : vector<8x32xf32> to vector<8xf32>
    %121 = vector.shape_cast %120 : vector<8xf32> to vector<8x1xf32>
    %cst_66 = arith.constant 3.200000e+01 : f32
    %122 = vector.broadcast %cst_66 : f32 to vector<8x1xf32>
    %123 = arith.divf %121, %122 : vector<8x1xf32>
    %cst_67 = arith.constant 9.99999974E-6 : f32
    %124 = vector.broadcast %cst_67 : f32 to vector<8x1xf32>
    %125 = arith.addf %123, %124 : vector<8x1xf32>
    %126 = math.rsqrt %125 : vector<8x1xf32>
    %127 = vector.broadcast %126 : vector<8x1xf32> to vector<8x32xf32>
    %128 = arith.mulf %118, %127 : vector<8x32xf32>
    %129 = vector.broadcast %19 : vector<1x32xf32> to vector<8x32xf32>
    %130 = arith.mulf %128, %129 : vector<8x32xf32>
    %131 = vector.broadcast %21 : vector<1x32xf32> to vector<8x32xf32>
    %132 = arith.addf %130, %131 : vector<8x32xf32>
    %cst_68 = arith.constant dense<0.000000e+00> : vector<8x64xf32>
    %133 = tpu.matmul %132, %11, %cst_68 {dimension_numbers = #tpu.dot_dimension_numbers<[1], [1], [0], [0], [0, 0, 1, 0], [], []>} : vector<8x32xf32>, vector<64x32xf32>, vector<8x64xf32> -> vector<8x64xf32>
    %134 = vector.broadcast %13 : vector<1x64xf32> to vector<8x64xf32>
    %135 = arith.addf %133, %134 : vector<8x64xf32>
    %cst_69 = arith.constant 0.000000e+00 : f32
    %136 = vector.broadcast %cst_69 : f32 to vector<8x64xf32>
    %137 = arith.maximumf %135, %136 : vector<8x64xf32>
    %cst_70 = arith.constant dense<0.000000e+00> : vector<8x32xf32>
    %138 = tpu.matmul %137, %15, %cst_70 {dimension_numbers = #tpu.dot_dimension_numbers<[1], [1], [0], [0], [0, 0, 1, 0], [], []>} : vector<8x64xf32>, vector<32x64xf32>, vector<8x32xf32> -> vector<8x32xf32>
    %139 = vector.broadcast %17 : vector<1x32xf32> to vector<8x32xf32>
    %140 = arith.addf %138, %139 : vector<8x32xf32>
    %141 = arith.addf %132, %140 : vector<8x32xf32>
    %cst_71 = arith.constant dense<0.000000e+00> : vector<8xf32>
    %142 = vector.multi_reduction <add>, %141, %cst_71 [1] : vector<8x32xf32> to vector<8xf32>
    %143 = vector.shape_cast %142 : vector<8xf32> to vector<8x1xf32>
    %cst_72 = arith.constant 3.200000e+01 : f32
    %144 = vector.broadcast %cst_72 : f32 to vector<8x1xf32>
    %145 = arith.divf %143, %144 : vector<8x1xf32>
    %146 = vector.broadcast %145 : vector<8x1xf32> to vector<8x32xf32>
    %147 = arith.subf %141, %146 : vector<8x32xf32>
    %148 = arith.mulf %147, %147 : vector<8x32xf32>
    %cst_73 = arith.constant dense<0.000000e+00> : vector<8xf32>
    %149 = vector.multi_reduction <add>, %148, %cst_73 [1] : vector<8x32xf32> to vector<8xf32>
    %150 = vector.shape_cast %149 : vector<8xf32> to vector<8x1xf32>
    %cst_74 = arith.constant 3.200000e+01 : f32
    %151 = vector.broadcast %cst_74 : f32 to vector<8x1xf32>
    %152 = arith.divf %150, %151 : vector<8x1xf32>
    %cst_75 = arith.constant 9.99999974E-6 : f32
    %153 = vector.broadcast %cst_75 : f32 to vector<8x1xf32>
    %154 = arith.addf %152, %153 : vector<8x1xf32>
    %155 = math.rsqrt %154 : vector<8x1xf32>
    %156 = vector.broadcast %155 : vector<8x1xf32> to vector<8x32xf32>
    %157 = arith.mulf %147, %156 : vector<8x32xf32>
    %158 = vector.broadcast %23 : vector<1x32xf32> to vector<8x32xf32>
    %159 = arith.mulf %157, %158 : vector<8x32xf32>
    %160 = vector.broadcast %25 : vector<1x32xf32> to vector<8x32xf32>
    %161 = arith.addf %159, %160 : vector<8x32xf32>
    %c1 = arith.constant 1 : index
    %c0_76 = arith.constant 0 : index
    %c0_77 = arith.constant 0 : index
    %162 = vector.load %arg2[%c1, %c0_76, %c0_77] : memref<2x96x32xf32, #tpu.memory_space<vmem>>, vector<1x96x32xf32>
    %163 = vector.shape_cast %162 : vector<1x96x32xf32> to vector<96x32xf32>
    %c1_78 = arith.constant 1 : index
    %c0_79 = arith.constant 0 : index
    %c0_80 = arith.constant 0 : index
    %164 = vector.load %arg3[%c1_78, %c0_79, %c0_80] : memref<2x1x96xf32, #tpu.memory_space<vmem>>, vector<1x1x96xf32>
    %165 = vector.shape_cast %164 : vector<1x1x96xf32> to vector<1x96xf32>
    %c1_81 = arith.constant 1 : index
    %c0_82 = arith.constant 0 : index
    %c0_83 = arith.constant 0 : index
    %166 = vector.load %arg4[%c1_81, %c0_82, %c0_83] : memref<2x32x32xf32, #tpu.memory_space<vmem>>, vector<1x32x32xf32>
    %167 = vector.shape_cast %166 : vector<1x32x32xf32> to vector<32x32xf32>
    %c1_84 = arith.constant 1 : index
    %c0_85 = arith.constant 0 : index
    %c0_86 = arith.constant 0 : index
    %168 = vector.load %arg5[%c1_84, %c0_85, %c0_86] : memref<2x1x32xf32, #tpu.memory_space<vmem>>, vector<1x1x32xf32>
    %169 = vector.shape_cast %168 : vector<1x1x32xf32> to vector<1x32xf32>
    %c1_87 = arith.constant 1 : index
    %c0_88 = arith.constant 0 : index
    %c0_89 = arith.constant 0 : index
    %170 = vector.load %arg6[%c1_87, %c0_88, %c0_89] : memref<2x64x32xf32, #tpu.memory_space<vmem>>, vector<1x64x32xf32>
    %171 = vector.shape_cast %170 : vector<1x64x32xf32> to vector<64x32xf32>
    %c1_90 = arith.constant 1 : index
    %c0_91 = arith.constant 0 : index
    %c0_92 = arith.constant 0 : index
    %172 = vector.load %arg7[%c1_90, %c0_91, %c0_92] : memref<2x1x64xf32, #tpu.memory_space<vmem>>, vector<1x1x64xf32>
    %173 = vector.shape_cast %172 : vector<1x1x64xf32> to vector<1x64xf32>
    %c1_93 = arith.constant 1 : index
    %c0_94 = arith.constant 0 : index
    %c0_95 = arith.constant 0 : index
    %174 = vector.load %arg8[%c1_93, %c0_94, %c0_95] : memref<2x32x64xf32, #tpu.memory_space<vmem>>, vector<1x32x64xf32>
    %175 = vector.shape_cast %174 : vector<1x32x64xf32> to vector<32x64xf32>
    %c1_96 = arith.constant 1 : index
    %c0_97 = arith.constant 0 : index
    %c0_98 = arith.constant 0 : index
    %176 = vector.load %arg9[%c1_96, %c0_97, %c0_98] : memref<2x1x32xf32, #tpu.memory_space<vmem>>, vector<1x1x32xf32>
    %177 = vector.shape_cast %176 : vector<1x1x32xf32> to vector<1x32xf32>
    %c1_99 = arith.constant 1 : index
    %c0_100 = arith.constant 0 : index
    %c0_101 = arith.constant 0 : index
    %178 = vector.load %arg10[%c1_99, %c0_100, %c0_101] : memref<2x1x32xf32, #tpu.memory_space<vmem>>, vector<1x1x32xf32>
    %179 = vector.shape_cast %178 : vector<1x1x32xf32> to vector<1x32xf32>
    %c1_102 = arith.constant 1 : index
    %c0_103 = arith.constant 0 : index
    %c0_104 = arith.constant 0 : index
    %180 = vector.load %arg11[%c1_102, %c0_103, %c0_104] : memref<2x1x32xf32, #tpu.memory_space<vmem>>, vector<1x1x32xf32>
    %181 = vector.shape_cast %180 : vector<1x1x32xf32> to vector<1x32xf32>
    %c1_105 = arith.constant 1 : index
    %c0_106 = arith.constant 0 : index
    %c0_107 = arith.constant 0 : index
    %182 = vector.load %arg12[%c1_105, %c0_106, %c0_107] : memref<2x1x32xf32, #tpu.memory_space<vmem>>, vector<1x1x32xf32>
    %183 = vector.shape_cast %182 : vector<1x1x32xf32> to vector<1x32xf32>
    %c1_108 = arith.constant 1 : index
    %c0_109 = arith.constant 0 : index
    %c0_110 = arith.constant 0 : index
    %184 = vector.load %arg13[%c1_108, %c0_109, %c0_110] : memref<2x1x32xf32, #tpu.memory_space<vmem>>, vector<1x1x32xf32>
    %185 = vector.shape_cast %184 : vector<1x1x32xf32> to vector<1x32xf32>
    %cst_111 = arith.constant dense<0.000000e+00> : vector<8x96xf32>
    %186 = tpu.matmul %161, %163, %cst_111 {dimension_numbers = #tpu.dot_dimension_numbers<[1], [1], [0], [0], [0, 0, 1, 0], [], []>} : vector<8x32xf32>, vector<96x32xf32>, vector<8x96xf32> -> vector<8x96xf32>
    %187 = vector.broadcast %165 : vector<1x96xf32> to vector<8x96xf32>
    %188 = arith.addf %186, %187 : vector<8x96xf32>
    %cst_112 = arith.constant 0.000000e+00 : f32
    %189 = vector.broadcast %cst_112 : f32 to vector<8x32xf32>
    %190 = vector.extract_strided_slice %188 {offsets = [0, 0], sizes = [8, 8], strides = [1, 1]} : vector<8x96xf32> to vector<8x8xf32>
    %cst_113 = arith.constant 0.353553385 : f32
    %191 = vector.broadcast %cst_113 : f32 to vector<8x8xf32>
    %192 = arith.mulf %190, %191 : vector<8x8xf32>
    %193 = vector.extract_strided_slice %188 {offsets = [0, 32], sizes = [8, 8], strides = [1, 1]} : vector<8x96xf32> to vector<8x8xf32>
    %194 = vector.extract_strided_slice %188 {offsets = [0, 64], sizes = [8, 8], strides = [1, 1]} : vector<8x96xf32> to vector<8x8xf32>
    %cst_114 = arith.constant dense<0.000000e+00> : vector<8x8xf32>
    %195 = tpu.matmul %192, %193, %cst_114 {dimension_numbers = #tpu.dot_dimension_numbers<[1], [1], [0], [0], [0, 0, 1, 0], [], []>} : vector<8x8xf32>, vector<8x8xf32>, vector<8x8xf32> -> vector<8x8xf32>
    %cst_115 = arith.constant dense<0xFF800000> : vector<8xf32>
    %196 = vector.multi_reduction <maximumf>, %195, %cst_115 [1] : vector<8x8xf32> to vector<8xf32>
    %197 = vector.shape_cast %196 : vector<8xf32> to vector<8x1xf32>
    %198 = vector.broadcast %197 : vector<8x1xf32> to vector<8x8xf32>
    %199 = arith.subf %195, %198 : vector<8x8xf32>
    %200 = math.exp %199 : vector<8x8xf32>
    %cst_116 = arith.constant dense<0.000000e+00> : vector<8xf32>
    %201 = vector.multi_reduction <add>, %200, %cst_116 [1] : vector<8x8xf32> to vector<8xf32>
    %202 = vector.shape_cast %201 : vector<8xf32> to vector<8x1xf32>
    %cst_117 = arith.constant dense<0.000000e+00> : vector<8x8xf32>
    %203 = tpu.matmul %200, %194, %cst_117 {dimension_numbers = #tpu.dot_dimension_numbers<[1], [0], [0], [1], [0, 0, 1, 1], [], []>} : vector<8x8xf32>, vector<8x8xf32>, vector<8x8xf32> -> vector<8x8xf32>
    %204 = tpu.reciprocal %202 {approx = true} : vector<8x1xf32> -> vector<8x1xf32>
    %205 = vector.broadcast %204 : vector<8x1xf32> to vector<8x8xf32>
    %206 = arith.mulf %203, %205 : vector<8x8xf32>
    %207 = vector.extract_strided_slice %167 {offsets = [0, 0], sizes = [32, 8], strides = [1, 1]} : vector<32x32xf32> to vector<32x8xf32>
    %cst_118 = arith.constant dense<0.000000e+00> : vector<8x32xf32>
    %208 = tpu.matmul %206, %207, %cst_118 {dimension_numbers = #tpu.dot_dimension_numbers<[1], [1], [0], [0], [0, 0, 1, 0], [], []>} : vector<8x8xf32>, vector<32x8xf32>, vector<8x32xf32> -> vector<8x32xf32>
    %209 = arith.addf %189, %208 : vector<8x32xf32>
    %210 = vector.extract_strided_slice %188 {offsets = [0, 8], sizes = [8, 8], strides = [1, 1]} : vector<8x96xf32> to vector<8x8xf32>
    %cst_119 = arith.constant 0.353553385 : f32
    %211 = vector.broadcast %cst_119 : f32 to vector<8x8xf32>
    %212 = arith.mulf %210, %211 : vector<8x8xf32>
    %213 = vector.extract_strided_slice %188 {offsets = [0, 40], sizes = [8, 8], strides = [1, 1]} : vector<8x96xf32> to vector<8x8xf32>
    %214 = vector.extract_strided_slice %188 {offsets = [0, 72], sizes = [8, 8], strides = [1, 1]} : vector<8x96xf32> to vector<8x8xf32>
    %cst_120 = arith.constant dense<0.000000e+00> : vector<8x8xf32>
    %215 = tpu.matmul %212, %213, %cst_120 {dimension_numbers = #tpu.dot_dimension_numbers<[1], [1], [0], [0], [0, 0, 1, 0], [], []>} : vector<8x8xf32>, vector<8x8xf32>, vector<8x8xf32> -> vector<8x8xf32>
    %cst_121 = arith.constant dense<0xFF800000> : vector<8xf32>
    %216 = vector.multi_reduction <maximumf>, %215, %cst_121 [1] : vector<8x8xf32> to vector<8xf32>
    %217 = vector.shape_cast %216 : vector<8xf32> to vector<8x1xf32>
    %218 = vector.broadcast %217 : vector<8x1xf32> to vector<8x8xf32>
    %219 = arith.subf %215, %218 : vector<8x8xf32>
    %220 = math.exp %219 : vector<8x8xf32>
    %cst_122 = arith.constant dense<0.000000e+00> : vector<8xf32>
    %221 = vector.multi_reduction <add>, %220, %cst_122 [1] : vector<8x8xf32> to vector<8xf32>
    %222 = vector.shape_cast %221 : vector<8xf32> to vector<8x1xf32>
    %cst_123 = arith.constant dense<0.000000e+00> : vector<8x8xf32>
    %223 = tpu.matmul %220, %214, %cst_123 {dimension_numbers = #tpu.dot_dimension_numbers<[1], [0], [0], [1], [0, 0, 1, 1], [], []>} : vector<8x8xf32>, vector<8x8xf32>, vector<8x8xf32> -> vector<8x8xf32>
    %224 = tpu.reciprocal %222 {approx = true} : vector<8x1xf32> -> vector<8x1xf32>
    %225 = vector.broadcast %224 : vector<8x1xf32> to vector<8x8xf32>
    %226 = arith.mulf %223, %225 : vector<8x8xf32>
    %227 = vector.extract_strided_slice %167 {offsets = [0, 8], sizes = [32, 8], strides = [1, 1]} : vector<32x32xf32> to vector<32x8xf32>
    %cst_124 = arith.constant dense<0.000000e+00> : vector<8x32xf32>
    %228 = tpu.matmul %226, %227, %cst_124 {dimension_numbers = #tpu.dot_dimension_numbers<[1], [1], [0], [0], [0, 0, 1, 0], [], []>} : vector<8x8xf32>, vector<32x8xf32>, vector<8x32xf32> -> vector<8x32xf32>
    %229 = arith.addf %209, %228 : vector<8x32xf32>
    %230 = vector.extract_strided_slice %188 {offsets = [0, 16], sizes = [8, 8], strides = [1, 1]} : vector<8x96xf32> to vector<8x8xf32>
    %cst_125 = arith.constant 0.353553385 : f32
    %231 = vector.broadcast %cst_125 : f32 to vector<8x8xf32>
    %232 = arith.mulf %230, %231 : vector<8x8xf32>
    %233 = vector.extract_strided_slice %188 {offsets = [0, 48], sizes = [8, 8], strides = [1, 1]} : vector<8x96xf32> to vector<8x8xf32>
    %234 = vector.extract_strided_slice %188 {offsets = [0, 80], sizes = [8, 8], strides = [1, 1]} : vector<8x96xf32> to vector<8x8xf32>
    %cst_126 = arith.constant dense<0.000000e+00> : vector<8x8xf32>
    %235 = tpu.matmul %232, %233, %cst_126 {dimension_numbers = #tpu.dot_dimension_numbers<[1], [1], [0], [0], [0, 0, 1, 0], [], []>} : vector<8x8xf32>, vector<8x8xf32>, vector<8x8xf32> -> vector<8x8xf32>
    %cst_127 = arith.constant dense<0xFF800000> : vector<8xf32>
    %236 = vector.multi_reduction <maximumf>, %235, %cst_127 [1] : vector<8x8xf32> to vector<8xf32>
    %237 = vector.shape_cast %236 : vector<8xf32> to vector<8x1xf32>
    %238 = vector.broadcast %237 : vector<8x1xf32> to vector<8x8xf32>
    %239 = arith.subf %235, %238 : vector<8x8xf32>
    %240 = math.exp %239 : vector<8x8xf32>
    %cst_128 = arith.constant dense<0.000000e+00> : vector<8xf32>
    %241 = vector.multi_reduction <add>, %240, %cst_128 [1] : vector<8x8xf32> to vector<8xf32>
    %242 = vector.shape_cast %241 : vector<8xf32> to vector<8x1xf32>
    %cst_129 = arith.constant dense<0.000000e+00> : vector<8x8xf32>
    %243 = tpu.matmul %240, %234, %cst_129 {dimension_numbers = #tpu.dot_dimension_numbers<[1], [0], [0], [1], [0, 0, 1, 1], [], []>} : vector<8x8xf32>, vector<8x8xf32>, vector<8x8xf32> -> vector<8x8xf32>
    %244 = tpu.reciprocal %242 {approx = true} : vector<8x1xf32> -> vector<8x1xf32>
    %245 = vector.broadcast %244 : vector<8x1xf32> to vector<8x8xf32>
    %246 = arith.mulf %243, %245 : vector<8x8xf32>
    %247 = vector.extract_strided_slice %167 {offsets = [0, 16], sizes = [32, 8], strides = [1, 1]} : vector<32x32xf32> to vector<32x8xf32>
    %cst_130 = arith.constant dense<0.000000e+00> : vector<8x32xf32>
    %248 = tpu.matmul %246, %247, %cst_130 {dimension_numbers = #tpu.dot_dimension_numbers<[1], [1], [0], [0], [0, 0, 1, 0], [], []>} : vector<8x8xf32>, vector<32x8xf32>, vector<8x32xf32> -> vector<8x32xf32>
    %249 = arith.addf %229, %248 : vector<8x32xf32>
    %250 = vector.extract_strided_slice %188 {offsets = [0, 24], sizes = [8, 8], strides = [1, 1]} : vector<8x96xf32> to vector<8x8xf32>
    %cst_131 = arith.constant 0.353553385 : f32
    %251 = vector.broadcast %cst_131 : f32 to vector<8x8xf32>
    %252 = arith.mulf %250, %251 : vector<8x8xf32>
    %253 = vector.extract_strided_slice %188 {offsets = [0, 56], sizes = [8, 8], strides = [1, 1]} : vector<8x96xf32> to vector<8x8xf32>
    %254 = vector.extract_strided_slice %188 {offsets = [0, 88], sizes = [8, 8], strides = [1, 1]} : vector<8x96xf32> to vector<8x8xf32>
    %cst_132 = arith.constant dense<0.000000e+00> : vector<8x8xf32>
    %255 = tpu.matmul %252, %253, %cst_132 {dimension_numbers = #tpu.dot_dimension_numbers<[1], [1], [0], [0], [0, 0, 1, 0], [], []>} : vector<8x8xf32>, vector<8x8xf32>, vector<8x8xf32> -> vector<8x8xf32>
    %cst_133 = arith.constant dense<0xFF800000> : vector<8xf32>
    %256 = vector.multi_reduction <maximumf>, %255, %cst_133 [1] : vector<8x8xf32> to vector<8xf32>
    %257 = vector.shape_cast %256 : vector<8xf32> to vector<8x1xf32>
    %258 = vector.broadcast %257 : vector<8x1xf32> to vector<8x8xf32>
    %259 = arith.subf %255, %258 : vector<8x8xf32>
    %260 = math.exp %259 : vector<8x8xf32>
    %cst_134 = arith.constant dense<0.000000e+00> : vector<8xf32>
    %261 = vector.multi_reduction <add>, %260, %cst_134 [1] : vector<8x8xf32> to vector<8xf32>
    %262 = vector.shape_cast %261 : vector<8xf32> to vector<8x1xf32>
    %cst_135 = arith.constant dense<0.000000e+00> : vector<8x8xf32>
    %263 = tpu.matmul %260, %254, %cst_135 {dimension_numbers = #tpu.dot_dimension_numbers<[1], [0], [0], [1], [0, 0, 1, 1], [], []>} : vector<8x8xf32>, vector<8x8xf32>, vector<8x8xf32> -> vector<8x8xf32>
    %264 = tpu.reciprocal %262 {approx = true} : vector<8x1xf32> -> vector<8x1xf32>
    %265 = vector.broadcast %264 : vector<8x1xf32> to vector<8x8xf32>
    %266 = arith.mulf %263, %265 : vector<8x8xf32>
    %267 = vector.extract_strided_slice %167 {offsets = [0, 24], sizes = [32, 8], strides = [1, 1]} : vector<32x32xf32> to vector<32x8xf32>
    %cst_136 = arith.constant dense<0.000000e+00> : vector<8x32xf32>
    %268 = tpu.matmul %266, %267, %cst_136 {dimension_numbers = #tpu.dot_dimension_numbers<[1], [1], [0], [0], [0, 0, 1, 0], [], []>} : vector<8x8xf32>, vector<32x8xf32>, vector<8x32xf32> -> vector<8x32xf32>
    %269 = arith.addf %249, %268 : vector<8x32xf32>
    %270 = vector.broadcast %169 : vector<1x32xf32> to vector<8x32xf32>
    %271 = arith.addf %269, %270 : vector<8x32xf32>
    %272 = arith.addf %161, %271 : vector<8x32xf32>
    %cst_137 = arith.constant dense<0.000000e+00> : vector<8xf32>
    %273 = vector.multi_reduction <add>, %272, %cst_137 [1] : vector<8x32xf32> to vector<8xf32>
    %274 = vector.shape_cast %273 : vector<8xf32> to vector<8x1xf32>
    %cst_138 = arith.constant 3.200000e+01 : f32
    %275 = vector.broadcast %cst_138 : f32 to vector<8x1xf32>
    %276 = arith.divf %274, %275 : vector<8x1xf32>
    %277 = vector.broadcast %276 : vector<8x1xf32> to vector<8x32xf32>
    %278 = arith.subf %272, %277 : vector<8x32xf32>
    %279 = arith.mulf %278, %278 : vector<8x32xf32>
    %cst_139 = arith.constant dense<0.000000e+00> : vector<8xf32>
    %280 = vector.multi_reduction <add>, %279, %cst_139 [1] : vector<8x32xf32> to vector<8xf32>
    %281 = vector.shape_cast %280 : vector<8xf32> to vector<8x1xf32>
    %cst_140 = arith.constant 3.200000e+01 : f32
    %282 = vector.broadcast %cst_140 : f32 to vector<8x1xf32>
    %283 = arith.divf %281, %282 : vector<8x1xf32>
    %cst_141 = arith.constant 9.99999974E-6 : f32
    %284 = vector.broadcast %cst_141 : f32 to vector<8x1xf32>
    %285 = arith.addf %283, %284 : vector<8x1xf32>
    %286 = math.rsqrt %285 : vector<8x1xf32>
    %287 = vector.broadcast %286 : vector<8x1xf32> to vector<8x32xf32>
    %288 = arith.mulf %278, %287 : vector<8x32xf32>
    %289 = vector.broadcast %179 : vector<1x32xf32> to vector<8x32xf32>
    %290 = arith.mulf %288, %289 : vector<8x32xf32>
    %291 = vector.broadcast %181 : vector<1x32xf32> to vector<8x32xf32>
    %292 = arith.addf %290, %291 : vector<8x32xf32>
    %cst_142 = arith.constant dense<0.000000e+00> : vector<8x64xf32>
    %293 = tpu.matmul %292, %171, %cst_142 {dimension_numbers = #tpu.dot_dimension_numbers<[1], [1], [0], [0], [0, 0, 1, 0], [], []>} : vector<8x32xf32>, vector<64x32xf32>, vector<8x64xf32> -> vector<8x64xf32>
    %294 = vector.broadcast %173 : vector<1x64xf32> to vector<8x64xf32>
    %295 = arith.addf %293, %294 : vector<8x64xf32>
    %cst_143 = arith.constant 0.000000e+00 : f32
    %296 = vector.broadcast %cst_143 : f32 to vector<8x64xf32>
    %297 = arith.maximumf %295, %296 : vector<8x64xf32>
    %cst_144 = arith.constant dense<0.000000e+00> : vector<8x32xf32>
    %298 = tpu.matmul %297, %175, %cst_144 {dimension_numbers = #tpu.dot_dimension_numbers<[1], [1], [0], [0], [0, 0, 1, 0], [], []>} : vector<8x64xf32>, vector<32x64xf32>, vector<8x32xf32> -> vector<8x32xf32>
    %299 = vector.broadcast %177 : vector<1x32xf32> to vector<8x32xf32>
    %300 = arith.addf %298, %299 : vector<8x32xf32>
    %301 = arith.addf %292, %300 : vector<8x32xf32>
    %cst_145 = arith.constant dense<0.000000e+00> : vector<8xf32>
    %302 = vector.multi_reduction <add>, %301, %cst_145 [1] : vector<8x32xf32> to vector<8xf32>
    %303 = vector.shape_cast %302 : vector<8xf32> to vector<8x1xf32>
    %cst_146 = arith.constant 3.200000e+01 : f32
    %304 = vector.broadcast %cst_146 : f32 to vector<8x1xf32>
    %305 = arith.divf %303, %304 : vector<8x1xf32>
    %306 = vector.broadcast %305 : vector<8x1xf32> to vector<8x32xf32>
    %307 = arith.subf %301, %306 : vector<8x32xf32>
    %308 = arith.mulf %307, %307 : vector<8x32xf32>
    %cst_147 = arith.constant dense<0.000000e+00> : vector<8xf32>
    %309 = vector.multi_reduction <add>, %308, %cst_147 [1] : vector<8x32xf32> to vector<8xf32>
    %310 = vector.shape_cast %309 : vector<8xf32> to vector<8x1xf32>
    %cst_148 = arith.constant 3.200000e+01 : f32
    %311 = vector.broadcast %cst_148 : f32 to vector<8x1xf32>
    %312 = arith.divf %310, %311 : vector<8x1xf32>
    %cst_149 = arith.constant 9.99999974E-6 : f32
    %313 = vector.broadcast %cst_149 : f32 to vector<8x1xf32>
    %314 = arith.addf %312, %313 : vector<8x1xf32>
    %315 = math.rsqrt %314 : vector<8x1xf32>
    %316 = vector.broadcast %315 : vector<8x1xf32> to vector<8x32xf32>
    %317 = arith.mulf %307, %316 : vector<8x32xf32>
    %318 = vector.broadcast %183 : vector<1x32xf32> to vector<8x32xf32>
    %319 = arith.mulf %317, %318 : vector<8x32xf32>
    %320 = vector.broadcast %185 : vector<1x32xf32> to vector<8x32xf32>
    %321 = arith.addf %319, %320 : vector<8x32xf32>
    %c0_150 = arith.constant 0 : index
    %c0_151 = arith.constant 0 : index
    %c0_152 = arith.constant 0 : index
    %322 = vector.load %arg14[%c0_150, %c0_151, %c0_152] : memref<1x8x32xf32, #tpu.memory_space<vmem>>, vector<1x8x32xf32>
    %323 = vector.shape_cast %322 : vector<1x8x32xf32> to vector<8x32xf32>
    %324 = vector.shape_cast %321 : vector<8x32xf32> to vector<1x8x32xf32>
    tpu.vector_store %arg14[%c0_150, %c0_151, %c0_152], %324 {strides = array<i32>} : memref<1x8x32xf32, #tpu.memory_space<vmem>>, vector<1x8x32xf32>,
    return
  }
  func.func @transform_0(%arg0: i32) -> (i32, i32, i32) {
    %c0_i32 = arith.constant 0 : i32
    %c0_i32_0 = arith.constant 0 : i32
    %c0_i32_1 = arith.constant 0 : i32
    return %arg0, %c0_i32, %c0_i32_0 : i32, i32, i32
  }
  func.func @transform_1(%arg0: i32) -> (i32, i32, i32) {
    %c0_i32 = arith.constant 0 : i32
    %c0_i32_0 = arith.constant 0 : i32
    %c0_i32_1 = arith.constant 0 : i32
    %c0_i32_2 = arith.constant 0 : i32
    return %c0_i32, %c0_i32_0, %c0_i32_1 : i32, i32, i32
  }
  func.func @transform_2(%arg0: i32) -> (i32, i32, i32) {
    %c0_i32 = arith.constant 0 : i32
    %c0_i32_0 = arith.constant 0 : i32
    %c0_i32_1 = arith.constant 0 : i32
    %c0_i32_2 = arith.constant 0 : i32
    return %c0_i32, %c0_i32_0, %c0_i32_1 : i32, i32, i32
  }
  func.func @transform_3(%arg0: i32) -> (i32, i32, i32) {
    %c0_i32 = arith.constant 0 : i32
    %c0_i32_0 = arith.constant 0 : i32
    %c0_i32_1 = arith.constant 0 : i32
    %c0_i32_2 = arith.constant 0 : i32
    return %c0_i32, %c0_i32_0, %c0_i32_1 : i32, i32, i32
  }
  func.func @transform_4(%arg0: i32) -> (i32, i32, i32) {
    %c0_i32 = arith.constant 0 : i32
    %c0_i32_0 = arith.constant 0 : i32
    %c0_i32_1 = arith.constant 0 : i32
    %c0_i32_2 = arith.constant 0 : i32
    return %c0_i32, %c0_i32_0, %c0_i32_1 : i32, i32, i32
  }
  func.func @transform_5(%arg0: i32) -> (i32, i32, i32) {
    %c0_i32 = arith.constant 0 : i32
    %c0_i32_0 = arith.constant 0 : i32
    %c0_i32_1 = arith.constant 0 : i32
    %c0_i32_2 = arith.constant 0 : i32
    return %c0_i32, %c0_i32_0, %c0_i32_1 : i32, i32, i32
  }
  func.func @transform_6(%arg0: i32) -> (i32, i32, i32) {
    %c0_i32 = arith.constant 0 : i32
    %c0_i32_0 = arith.constant 0 : i32
    %c0_i32_1 = arith.constant 0 : i32
    %c0_i32_2 = arith.constant 0 : i32
    return %c0_i32, %c0_i32_0, %c0_i32_1 : i32, i32, i32
  }
  func.func @transform_7(%arg0: i32) -> (i32, i32, i32) {
    %c0_i32 = arith.constant 0 : i32
    %c0_i32_0 = arith.constant 0 : i32
    %c0_i32_1 = arith.constant 0 : i32
    %c0_i32_2 = arith.constant 0 : i32
    return %c0_i32, %c0_i32_0, %c0_i32_1 : i32, i32, i32
  }
  func.func @transform_8(%arg0: i32) -> (i32, i32, i32) {
    %c0_i32 = arith.constant 0 : i32
    %c0_i32_0 = arith.constant 0 : i32
    %c0_i32_1 = arith.constant 0 : i32
    %c0_i32_2 = arith.constant 0 : i32
    return %c0_i32, %c0_i32_0, %c0_i32_1 : i32, i32, i32
  }
  func.func @transform_9(%arg0: i32) -> (i32, i32, i32) {
    %c0_i32 = arith.constant 0 : i32
    %c0_i32_0 = arith.constant 0 : i32
    %c0_i32_1 = arith.constant 0 : i32
    %c0_i32_2 = arith.constant 0 : i32
    return %c0_i32, %c0_i32_0, %c0_i32_1 : i32, i32, i32
  }
  func.func @transform_10(%arg0: i32) -> (i32, i32, i32) {
    %c0_i32 = arith.constant 0 : i32
    %c0_i32_0 = arith.constant 0 : i32
    %c0_i32_1 = arith.constant 0 : i32
    %c0_i32_2 = arith.constant 0 : i32
    return %c0_i32, %c0_i32_0, %c0_i32_1 : i32, i32, i32
  }
  func.func @transform_11(%arg0: i32) -> (i32, i32, i32) {
    %c0_i32 = arith.constant 0 : i32
    %c0_i32_0 = arith.constant 0 : i32
    %c0_i32_1 = arith.constant 0 : i32
    %c0_i32_2 = arith.constant 0 : i32
    return %c0_i32, %c0_i32_0, %c0_i32_1 : i32, i32, i32
  }
  func.func @transform_12(%arg0: i32) -> (i32, i32, i32) {
    %c0_i32 = arith.constant 0 : i32
    %c0_i32_0 = arith.constant 0 : i32
    %c0_i32_1 = arith.constant 0 : i32
    %c0_i32_2 = arith.constant 0 : i32
    return %c0_i32, %c0_i32_0, %c0_i32_1 : i32, i32, i32
  }
  func.func @transform_13(%arg0: i32) -> (i32, i32, i32) {
    %c0_i32 = arith.constant 0 : i32
    %c0_i32_0 = arith.constant 0 : i32
    %c0_i32_1 = arith.constant 0 : i32
    return %arg0, %c0_i32, %c0_i32_0 : i32, i32, i32
  }
}

</mosaic_0001>

<bundles_post_ra>
// kernel: transformer_encoder_forward.1
= control target key start
LH: loop header
LB: loop body
LE: loop exit
PB: predicated region body
PF: predicated region fallthrough
CT: control target
= control target key end

     0   :  { %s5116_s0 = inlined_call_operand.vmem [shape: f32[2,8,32], index: 0, kind: input, shape index: {}]   ;;  %s5117_s1 = inlined_call_operand.vmem [shape: f32[2,96,32], index: 1, kind: input, shape index: {}]   ;;  %s5118_s2 = inlined_call_operand.vmem [shape: f32[2,1,96], index: 2, kind: input, shape index: {}]   ;;  %s5119_s3 = inlined_call_operand.vmem [shape: f32[2,32,32], index: 3, kind: input, shape index: {}]   ;;  %s5120_s4 = inlined_call_operand.vmem [shape: f32[2,1,32], index: 4, kind: input, shape index: {}]   ;;  %s5121_s5 = inlined_call_operand.vmem [shape: f32[2,64,32], index: 5, kind: input, shape index: {}]   ;;  %s5122_s6 = inlined_call_operand.vmem [shape: f32[2,1,64], index: 6, kind: input, shape index: {}]   ;;  %s5123_s7 = inlined_call_operand.vmem [shape: f32[2,32,64], index: 7, kind: input, shape index: {}]   ;;  %s5124_s8 = inlined_call_operand.vmem [shape: f32[2,1,32], index: 8, kind: input, shape index: {}]   ;;  %s5125_s9 = inlined_call_operand.vmem [shape: f32[2,1,32], index: 9, kind: input, shape index: {}]   ;;  %s5126_s10 = inlined_call_operand.vmem [shape: f32[2,1,32], index: 10, kind: input, shape index: {}]   ;;  %s5127_s11 = inlined_call_operand.vmem [shape: f32[2,1,32], index: 11, kind: input, shape index: {}]   ;;  %s5128_s12 = inlined_call_operand.vmem [shape: f32[2,1,32], index: 12, kind: input, shape index: {}]   ;;  %s5129_s13 = inlined_call_operand.hbm [shape: f32[2,8,32], index: 13, kind: output, shape index: {}]  }
   0x1   :  { %5143 = sst [smem:[#allocation6_spill]] %s5116_s0 }
   0x2   :  { %5144 = sst [smem:[#allocation7_spill]] %s5117_s1 }
   0x3   :  { %5145 = sst [smem:[#allocation8_spill]] %s5118_s2 }
   0x4   :  { %18 = vsyncpa [#allocation3], 0 }
   0x5   :  { %20 = vsyncpa [#allocation3 + $0x1], 0  ;;  %s4425_s25 = smov 0   ;;  %s4427_s26 = smov 0  }
   0x6   :  { %s4429_s27 = smov 0   ;;  %s4431_s28 = smov 0  }
   0x7 LB: > { %s4446_s29 = sadd.s32 4294967295, %s4338_s28   ;;  %s3375_s30 = sadd.s32 4294967294, %s4338_s28   ;;  %s4338_s28 = sphi %s4431_s28, %s5172_s28   ;;  %s4334_s27 = sphi %s4429_s27, %s5171_s27   ;;  %s4330_s26 = sphi %s4427_s26, %s5170_s26   ;;  %s4326_s25 = sphi %s4425_s25, %s5169_s25  }
   0x8   : > { %s4450_s14 = sadd.s32 1, %s4338_s28   ;;  %s311_s15 = sadd.s32 1, %s4334_s27 }
   0x9   : > { %s308_s16 = ssub.s32 %s4338_s28, %s4450_s14  ;;  %p321_p0 = scmp.ne.s32.totalorder %s4334_s27, %s4330_s26 }
   0xa   : > { %p309_p1 = scmp.eq.s32.totalorder %s308_s16, 0  ;;  %p322_p2 = scmp.eq.s32.totalorder %s4446_s29, 1 }
   0xb   : > { %p327_p3 = scmp.ne.s32.totalorder %s4330_s26, %s4326_s25  ;;  %p328_p4 = scmp.eq.s32.totalorder %s3375_s30, 1 }
   0xc   : > { %s4461_s17 = scalar_select %p309_p1, %s4334_s27, %s311_s15  }
   0xd   : > { %p4463_p5 = por %p322_p2, %p321_p0  ;;  %p4467_p6 = por %p328_p4, %p327_p3 }
   0xe   : > { %5146 = sst [smem:[#allocation5_spill]] %s4461_s17  ;;  %p3378_p7 = scmp.ge.s32.totalorder %s4338_s28, 1 }
   0xf   : > { %p389_p8 = scmp.lt.s32.totalorder %s4338_s28, 3 }
  0x11   : > { %p390_p9 = pnand %p3378_p7, %p389_p8 }
  0x12   : > { %s5149_s1 = sld [smem:[#allocation7_spill]] (!%p390_p9)  ;;  %vm479_vm0 = vcmask (!%p390_p9), 261120   ;;  %v4340_v2 = vmov (!%p390_p9), 0.0|0.0   ;;  %vm4341_vm2 = vmmov (!%p390_p9), 0   ;;  %v4342_v5 = vmov (!%p390_p9), 0.0   ;;  %p432_p10 = scmp.lt.s32.totalorder (!%p390_p9), %s4446_s29, 1 }
  0x13   : > { %393 = sbr.rel (%p390_p9) target bundleno = 6232 (0x1858), region = 72  ;;  %3963 = vmatprep.subr.bf16.mxu0 (!%p390_p9), %v4340_v2  ;;  %vm4482_vm1 = vmpackc.low (!%p390_p9), %vm479_vm0, %vm479_vm0  ;;  %3705 = vmatprep.mubr.msk.f32.mxu0 (!%p390_p9), %vm4341_vm2, %v4342_v5  ;;  %s5152_s0 = sld [smem:[#allocation6_spill]] (!%p390_p9)  ;;  %vm593_vm3 = vcmask (!%p390_p9), 64512   ;;  %v450_v45 = vld [vmem:[%s5119_s3] sm:$0xff] (!%p390_p9)  ;;  %v451_v46 = vld [vmem:[%s5119_s3 + $0x8] sm:$0xff] (!%p390_p9)  ;;  %vm1751_vm5 = vcmask (!%p390_p9), 523264  }
  0x14   : > { %3708 = vmatprep.subr.mxu1 (!%p390_p9), %v4342_v5  ;;  %3710 = vmatprep.mubr.msk.f32.mxu1 (!%p390_p9), %vm4341_vm2, %v4342_v5  ;;  %s5153_s2 = sld [smem:[#allocation8_spill]] (!%p390_p9)  ;;  %s5135_s15 = smov (!%p390_p9), 64   ;;  %v4601_v47 = vpack.i.bf16 (!%p390_p9), %v451_v46, %v450_v45  ;;  %vm4607_vm4 = vmpackc.low (!%p390_p9), %vm593_vm3, %vm593_vm3  ;;  %v452_v58 = vld [vmem:[%s5119_s3 + $0x10] sm:$0xff] (!%p390_p9)  ;;  %v453_v59 = vld [vmem:[%s5119_s3 + $0x18] sm:$0xff] (!%p390_p9) }
  0x15   : > { %s5133_s16 = smov (!%p390_p9), 88   ;;  %s5130_s22 = smov (!%p390_p9), 48   ;;  %v4624_v60 = vpack.i.bf16 (!%p390_p9), %v453_v59, %v452_v58  ;;  %vm4748_vm6 = vmpackc.low (!%p390_p9), %vm1751_vm5, %vm1751_vm5  ;;  %v3478_v4 = vld [vmem:[%s5123_s7 + $0x38] sm:$0xff] (!%p390_p9) }
  0x16   : > { %s5132_s23 = smov (!%p390_p9), 72   ;;  %s5136_s24 = smov (!%p390_p9), 104  }
  0x17   : > { %s5134_s30 = smov (!%p390_p9), 40  }
  0x18   : > { %v437_v0 = vld [vmem:[%s5149_s1] sm:$0xff] (!%p390_p9)  ;;  %v438_v1 = vld [vmem:[%s5149_s1 + $0x8] sm:$0xff] (!%p390_p9)  ;;  %v439_v6 = vld [vmem:[%s5149_s1 + $0x10] sm:$0xff] (!%p390_p9) }
  0x19   : > { %v3964_v3 = vpack.c.bf16 (!%p390_p9), %v438_v1, %v437_v0  ;;  %v440_v7 = vld [vmem:[%s5149_s1 + $0x18] sm:$0xff] (!%p390_p9)  ;;  %v441_v9 = vld [vmem:[%s5149_s1 + $0x20] sm:$0xff] (!%p390_p9)  ;;  %v442_v10 = vld [vmem:[%s5149_s1 + $0x28] sm:$0xff] (!%p390_p9) }
  0x1a   : > { %v3968_v8 = vpack.c.bf16 %v440_v7, %v439_v6  ;;  %v3972_v11 = vpack.c.bf16 %v442_v10, %v441_v9  ;;  %v443_v12 = vld [vmem:[%s5149_s1 + $0x30] sm:$0xff]  ;;  %v444_v13 = vld [vmem:[%s5149_s1 + $0x38] sm:$0xff]  ;;  %v445_v15 = vld [vmem:[%s5149_s1 + $0x40] sm:$0xff]  ;;  %s433_s20 = scalar_select %p432_p10, %s4446_s29, 1  ;;  %v3996_v7 = vpack.c.bf16 %v451_v46, %v450_v45 }
  0x1b   : > { %3966 = vmatpush3.bf16.xpose.msk.msra.mxu0 %vm4482_vm1, %v3964_v3  ;;  %v3976_v14 = vpack.c.bf16 %v444_v13, %v443_v12  ;;  %v446_v16 = vld [vmem:[%s5149_s1 + $0x48] sm:$0xff]  ;;  %v447_v18 = vld [vmem:[%s5149_s1 + $0x50] sm:$0xff]  ;;  %v448_v19 = vld [vmem:[%s5149_s1 + $0x58] sm:$0xff] }
  0x1c   : > { %3967 = vmatprep.subr.bf16.mxu0 %v4340_v2  ;;  %v3980_v17 = vpack.c.bf16 %v446_v16, %v445_v15  ;;  %v3984_v20 = vpack.c.bf16 %v448_v19, %v447_v18  ;;  %s3380_s21 = sshll.u32 %s433_s20, 3  ;;  %v3381_v22 = vld [vmem:[%s5153_s2] ss:$0 sm:$0xff]  ;;  %s5138_s20 = smov 120  }
  0x1d   : > { %s435_s17 = scalar_lea.vmem %s5152_s0, %s3380_s21  ;;  %s5131_s21 = smov 56  }
  0x1e   : > { %v4544_v21 = vld [vmem:[%s435_s17] sm:$0xff]  ;;  %s4344_s17 = smov 96  }
  0x23   : > { %3970 = vmatpush3.bf16.xpose.msk.msra.mxu0 %vm4482_vm1, %v3968_v8 }
  0x24   : > { %3971 = vmatprep.subr.bf16.mxu0 %v4340_v2 }
  0x2b   : > { %3974 = vmatpush3.bf16.xpose.msk.msra.mxu0 %vm4482_vm1, %v3972_v11  ;;  %v4000_v11 = vpack.c.bf16 %v453_v59, %v452_v58 }
  0x2c   : > { %3975 = vmatprep.subr.bf16.mxu0 %v4340_v2 }
  0x33   : > { %3978 = vmatpush3.bf16.xpose.msk.msra.mxu0 %vm4482_vm1, %v3976_v14 }
  0x34   : > { %3979 = vmatprep.subr.bf16.mxu0 %v4340_v2 }
  0x3b   : > { %3982 = vmatpush3.bf16.xpose.msk.msra.mxu0 %vm4482_vm1, %v3980_v17 }
  0x3c   : > { %3983 = vmatprep.subr.bf16.mxu0 %v4340_v2 }
  0x43   : > { %3986 = vmatpush3.bf16.xpose.msk.msra.mxu0 %vm4482_vm1, %v3984_v20 }
  0x44   : > { %4003 = vmatprep.subr.bf16.mxu0 %v4340_v2 }
  0x4a   : > { %3706 = vmatmul.mubr.msk.f32.vlgmr.msra.gmra.mrb[0].mxu0 %vm479_vm0, %v4544_v21 }
  0x4b   : > { %3768 = vmatprep.mubr.msk.f32.mxu0 %vm4341_vm2, %v4342_v5 }
 0x11d   : > { %v585_v23 = vpop.f32.mrb[0].mxu0 }
 0x11e   : > { %v4553_v24 = vadd.f32 %v3381_v22, %v585_v23  ;;  %v3707_v25 = vpop.f32.mrb[1].mxu0 }
 0x120   : > { %678 = vrot.lane.b32.xlu1 %v4553_v24, %s5135_s15  ;;  %591 = vrot.lane.b32.xlu0 %v4553_v24, %s4344_s17  ;;  %v4562_v26 = vmul.f32 0.35355338, %v4553_v24  ;;  %s5141_s15 = smov 112  }
 0x124   : > { %758 = vrot.lane.b32.xlu1 %v4553_v24, %s5133_s16  ;;  %s5158_s16 = smov 112  }
 0x128   : > { %756 = vrot.lane.b32.xlu1 %v4562_v26, %s5138_s20 }
 0x192   : > { %v592_v27 = vpop.permute.xlu0 %591  ;;  %v679_v28 = vpop.permute.xlu1 %678 }
 0x193   : > { %3709 = vmatpush3.xpose.msk.msra.mxu1 %vm593_vm3, %v592_v27 }
 0x194   : > { %3713 = vmatprep.subr.mxu1 %v4342_v5 }
 0x196   : > { %3711 = vmatmul.mubr.msk.f32.vlgmr.msra.gmra.mrb[0].mxu1 %vm593_vm3, %v4562_v26  ;;  %v759_v35 = vpop.permute.xlu1 %758 }
 0x197   : > { %3714 = vmatpush3.msra.mxu1 %v679_v28  ;;  %3715 = vmatprep.mubr.msk.f32.mxu1 %vm4341_vm2, %v4342_v5 }
 0x198   : > { %3718 = vmatprep.subr.mxu1 %v4342_v5 }
 0x19a   : > { %v757_v38 = vpop.permute.xlu1 %756 }
 0x269   : > { %v665_v29 = vpop.f32.mrb[0].mxu1 }
 0x26a   : > { %v3712_v30 = vpop.f32.mrb[1].mxu1  ;;  %v669_v31 = vsel %vm593_vm3, %v665_v29, -inf }
 0x26b   : > { %670 = vmax.xlane.f32.xlu0 %v669_v31 }
 0x281   : > { %843 = vrot.lane.b32.xlu0 %v4553_v24, %s5131_s21  ;;  %s5159_s21 = smov 80  }
 0x2f8   : > { %v671_v32 = vpop.xlane.xlu0 %670 }
 0x2f9   : > { %v672_v33 = vsub.f32 %v665_v29, %v671_v32 }
 0x2fb   : > { %v673_v34 = vmul.f32 1.442695, %v672_v33 }
 0x2fc   : > { %v844_v39 = vpop.permute.xlu0 %843 }
 0x2fd   : > { %4236 = vpow2.f32 %v673_v34 }
 0x307   : > { %v4237_v36 = vpop.eup %4236 }
 0x308   : > { %3716 = vmatmul.mubr.msk.f32.vlgmr.msra.gmra.mrb[2].mxu1 %vm593_vm3, %v4237_v36  ;;  %v675_v37 = vsel %vm593_vm3, %v4237_v36, 0.0 }
 0x309   : > { %3719 = vmatpush3.xpose.msk.msra.mxu1 %vm593_vm3, %v759_v35  ;;  %676 = vadd.xlane.f32.xlu0 %v675_v37 }
 0x30a   : > { %3720 = vmatprep.mubr.msk.f32.mxu1 %vm4341_vm2, %v4342_v5  ;;  %3723 = vmatprep.subr.mxu1 %v4342_v5 }
 0x30c   : > { %3721 = vmatmul.mubr.msk.f32.vlgmr.msra.gmra.mrb[4].mxu1 %vm593_vm3, %v757_v38 }
 0x30d   : > { %3724 = vmatpush3.msra.mxu1 %v844_v39  ;;  %3725 = vmatprep.mubr.msk.f32.mxu1 %vm4341_vm2, %v4342_v5 }
 0x30e   : > { %3987 = vmatprep.subr.bf16.mxu1 %v4340_v2 }
 0x31f   : > { %1182 = vrot.lane.b32.xlu0 %v4553_v24, %s5130_s22  ;;  %s5162_s22 = smov 120  }
 0x323   : > { %1352 = vrot.lane.b32.xlu0 %v4553_v24, %s5132_s23  ;;  %s5166_s23 = smov 104  }
 0x327   : > { %1350 = vrot.lane.b32.xlu0 %v4562_v26, %s5136_s24 }
 0x32b   : > { %1437 = vrot.lane.b32.xlu0 %v4553_v24, %s5134_s30  ;;  %s5140_s30 = smov 80  }
 0x396   : > { %v677_v10 = vpop.xlane.xlu0 %676 }
 0x39a   : > { %v1183_v16 = vpop.permute.xlu0 %1182 }
 0x39e   : > { %v1353_v29 = vpop.permute.xlu0 %1352 }
 0x3a2   : > { %v1351_v30 = vpop.permute.xlu0 %1350 }
 0x3a6   : > { %v1438_v32 = vpop.permute.xlu0 %1437 }
 0x3db   : > { %v750_v40 = vpop.f32.mrb[2].mxu1 }
 0x3dc   : > { %v3717_v41 = vpop.f32.mrb[3].mxu1 }
 0x3df   : > { %v830_v42 = vpop.f32.mrb[4].mxu1 }
 0x3e0   : > { %v3722_v43 = vpop.f32.mrb[5].mxu1  ;;  %v834_v44 = vsel %vm593_vm3, %v830_v42, -inf }
 0x3e1   : > { %835 = vmax.xlane.f32.xlu1 %v834_v44 }
 0x3f2   : > { %4177 = vrot.lane.b32.xlu1 %v4601_v47, %s5138_s20 }
 0x46e   : > { %v836_v48 = vpop.xlane.xlu1 %835 }
 0x46f   : > { %v837_v49 = vsub.f32 %v830_v42, %v836_v48 }
 0x471   : > { %v838_v50 = vmul.f32 1.442695, %v837_v49 }
 0x472   : > { %v4178_v51 = vpop.permute.xlu1 %4177 }
 0x473   : > { %4238 = vpow2.f32 %v838_v50  ;;  %v4180_v52 = vunpack.i.h.bf16 %v4178_v51  ;;  %v4179_v53 = vunpack.i.l.bf16 %v4178_v51 }
 0x475   : > { %v3988_v54 = vpack.c.bf16 %v4180_v52, %v4179_v53 }
 0x47d   : > { %v4239_v56 = vpop.eup %4238 }
 0x47e   : > { %3726 = vmatmul.mubr.msk.f32.vlgmr.msra.gmra.mrb[6].mxu1 %vm593_vm3, %v4239_v56  ;;  %v840_v57 = vsel %vm593_vm3, %v4239_v56, 0.0 }
 0x47f   : > { %841 = vadd.xlane.f32.xlu1 %v840_v57  ;;  %3990 = vmatpush3.bf16.xpose.msk.msra.mxu1 %vm4607_vm4, %v3988_v54 }
 0x480   : > { %3991 = vmatprep.subr.bf16.mxu1 %v4340_v2  ;;  %3736 = vmatprep.mubr.msk.f32.mxu1 %vm4341_vm2, %v4342_v5 }
 0x490   : > { %4182 = vrot.lane.b32.xlu1 %v4624_v60, %s5138_s20  ;;  %s5160_s20 = smov 64  }
 0x494   : > { %1097 = vrot.lane.b32.xlu1 %v4553_v24, %s5140_s30  ;;  %s5165_s30 = smov 72  }
 0x498   : > { %1095 = vrot.lane.b32.xlu1 %v4562_v26, %s5141_s15 }
 0x50c   : > { %v842_v61 = vpop.xlane.xlu1 %841 }
 0x50d   : > { %4240 = vrcp.f32 %v842_v61 }
 0x50e   : > { %4242 = vrcp.f32 %v677_v10 }
 0x510   : > { %v4183_v62 = vpop.permute.xlu1 %4182 }
 0x511   : > { %v4185_v63 = vunpack.i.h.bf16 %v4183_v62  ;;  %v4184_v0 = vunpack.i.l.bf16 %v4183_v62 }
 0x513   : > { %v3992_v1 = vpack.c.bf16 %v4185_v63, %v4184_v0 }
 0x514   : > { %v1098_v13 = vpop.permute.xlu1 %1097 }
 0x515   : > { %3994 = vmatpush3.bf16.xpose.msk.msra.mxu1 %vm4607_vm4, %v3992_v1 }
 0x516   : > { %3995 = vmatprep.subr.bf16.mxu1 %v4340_v2 }
 0x517   : > { %v4241_v3 = vpop.eup %4240 }
 0x518   : > { %v4243_v12 = vpop.eup %4242  ;;  %v1096_v15 = vpop.permute.xlu1 %1095 }
 0x519   : > { %v755_v14 = vmul.f32 %v4243_v12, %v750_v40 }
 0x551   : > { %v915_v6 = vpop.f32.mrb[6].mxu1 }
 0x552   : > { %v920_v8 = vmul.f32 %v4241_v3, %v915_v6  ;;  %v3727_v9 = vpop.f32.mrb[7].mxu1 }
 0x554   : > { %3737 = vmatmul.mubr.msk.f32.vlgmr.msra.gmra.mrb[8].mxu1 %vm593_vm3, %v920_v8 }
 0x555   : > { %3998 = vmatpush3.bf16.xpose.msk.msra.mxu1 %vm4607_vm4, %v3996_v7  ;;  %3747 = vmatprep.mubr.msk.f32.mxu1 %vm4341_vm2, %v4342_v5 }
 0x556   : > { %3999 = vmatprep.subr.bf16.mxu1 %v4340_v2 }
 0x55d   : > { %4002 = vmatpush3.bf16.xpose.msk.msra.mxu1 %vm4607_vm4, %v4000_v11  ;;  %v3427_v11 = vld [vmem:[%s5120_s4] ss:$0 sm:$0xff] }
 0x55e   : > { %3750 = vmatprep.subr.mxu1 %v4342_v5 }
 0x564   : > { %3748 = vmatmul.mubr.msk.f32.vlgmr.msra.gmra.mrb[10].mxu1 %vm593_vm3, %v755_v14 }
 0x565   : > { %3751 = vmatpush3.xpose.msk.msra.mxu1 %vm593_vm3, %v1098_v13  ;;  %3752 = vmatprep.mubr.msk.f32.mxu1 %vm4341_vm2, %v4342_v5 }
 0x566   : > { %3755 = vmatprep.subr.mxu1 %v4342_v5 }
 0x568   : > { %3753 = vmatmul.mubr.msk.f32.vlgmr.msra.gmra.mrb[12].mxu1 %vm593_vm3, %v1096_v15 }
 0x569   : > { %3756 = vmatpush3.msra.mxu1 %v1183_v16  ;;  %3757 = vmatprep.mubr.msk.f32.mxu1 %vm4341_vm2, %v4342_v5 }
 0x56a   : > { %3771 = vmatprep.subr.mxu1 %v4342_v5 }
 0x627   : > { %v1010_v17 = vpop.f32.mrb[8].mxu1 }
 0x628   : > { %v3738_v18 = vpop.f32.mrb[9].mxu1 }
 0x629   : > { %v455_v18 = vld [vmem:[%s5121_s5] sm:$0xff] }
 0x637   : > { %v1091_v19 = vpop.f32.mrb[10].mxu1 }
 0x638   : > { %v4653_v20 = vadd.f32 %v1091_v19, %v1010_v17  ;;  %v3749_v22 = vpop.f32.mrb[11].mxu1  ;;  %v456_v19 = vld [vmem:[%s5121_s5 + $0x8] sm:$0xff] }
 0x639   : > { %v458_v22 = vld [vmem:[%s5121_s5 + $0x18] sm:$0xff] }
 0x63b   : > { %v1169_v23 = vpop.f32.mrb[12].mxu1 }
 0x63c   : > { %v3754_v24 = vpop.f32.mrb[13].mxu1  ;;  %v1173_v25 = vsel %vm593_vm3, %v1169_v23, -inf }
 0x63d   : > { %1174 = vmax.xlane.f32.xlu1 %v1173_v25 }
 0x6ca   : > { %v1175_v26 = vpop.xlane.xlu1 %1174 }
 0x6cb   : > { %v1176_v27 = vsub.f32 %v1169_v23, %v1175_v26 }
 0x6cd   : > { %v1177_v28 = vmul.f32 1.442695, %v1176_v27 }
 0x6cf   : > { %4244 = vpow2.f32 %v1177_v28 }
 0x6d9   : > { %v4245_v31 = vpop.eup %4244 }
 0x6da   : > { %3758 = vmatmul.mubr.msk.f32.vlgmr.msra.gmra.mrb[14].mxu1 %vm593_vm3, %v4245_v31  ;;  %v1179_v38 = vsel %vm593_vm3, %v4245_v31, 0.0 }
 0x6db   : > { %3772 = vmatpush3.xpose.msk.msra.mxu1 %vm593_vm3, %v1353_v29  ;;  %3773 = vmatprep.mubr.msk.f32.mxu1 %vm4341_vm2, %v4342_v5  ;;  %v459_v29 = vld [vmem:[%s5121_s5 + $0x20] sm:$0xff] }
 0x6dc   : > { %3776 = vmatprep.subr.mxu1 %v4342_v5 }
 0x6de   : > { %3774 = vmatmul.mubr.msk.f32.vlgmr.msra.gmra.mrb[16].mxu1 %vm593_vm3, %v1351_v30  ;;  %v460_v30 = vld [vmem:[%s5121_s5 + $0x28] sm:$0xff] }
 0x6df   : > { %3777 = vmatpush3.msra.mxu1 %v1438_v32  ;;  %3778 = vmatprep.mubr.msk.f32.mxu1 %vm4341_vm2, %v4342_v5  ;;  %v4028_v31 = vpack.c.bf16 %v460_v30, %v459_v29  ;;  %v461_v32 = vld [vmem:[%s5121_s5 + $0x30] sm:$0xff]  ;;  %v3446_v29 = vld [vmem:[%s5127_s11] ss:$0 sm:$0xff] }
 0x6e0   : > { %4011 = vmatprep.subr.bf16.mxu1 %v4340_v2 }
 0x7ad   : > { %v1254_v33 = vpop.f32.mrb[14].mxu1 }
 0x7ae   : > { %v3759_v34 = vpop.f32.mrb[15].mxu1 }
 0x7b1   : > { %v1424_v35 = vpop.f32.mrb[16].mxu1 }
 0x7b2   : > { %v3775_v36 = vpop.f32.mrb[17].mxu1  ;;  %v1428_v37 = vsel %vm593_vm3, %v1424_v35, -inf }
 0x7b3   : > { %1429 = vmax.xlane.f32.xlu1 %v1428_v37  ;;  %v465_v36 = vld [vmem:[%s5123_s7 + $0x8] sm:$0xff] }
 0x7b7   : > { %1180 = vadd.xlane.f32.xlu1 %v1179_v38  ;;  %v3533_v38 = vld [vmem:[%s5122_s6 + $0x1] ss:$0 sm:$0xff] }
 0x7c8   : > { %4187 = vrot.lane.b32.xlu1 %v4601_v47, %s5141_s15 }
 0x7cc   : > { %4192 = vrot.lane.b32.xlu1 %v4601_v47, %s5136_s24 }
 0x7d0   : > { %4197 = vrot.lane.b32.xlu1 %v4624_v60, %s5141_s15  ;;  %s5164_s15 = smov 48  }
 0x7d4   : > { %4202 = vrot.lane.b32.xlu1 %v4624_v60, %s5136_s24  ;;  %s5161_s24 = smov 88  }
 0x840   : > { %v1430_v39 = vpop.xlane.xlu1 %1429 }
 0x841   : > { %v1431_v40 = vsub.f32 %v1424_v35, %v1430_v39  ;;  %v464_v35 = vld [vmem:[%s5123_s7] sm:$0xff]  ;;  %v466_v39 = vld [vmem:[%s5123_s7 + $0x10] sm:$0xff] }
 0x842   : > { %v4036_v37 = vpack.c.bf16 %v465_v36, %v464_v35 }
 0x843   : > { %v1432_v41 = vmul.f32 1.442695, %v1431_v40  ;;  %v467_v40 = vld [vmem:[%s5123_s7 + $0x18] sm:$0xff] }
 0x844   : > { %v1181_v42 = vpop.xlane.xlu1 %1180 }
 0x845   : > { %4246 = vpow2.f32 %v1432_v41  ;;  %v4040_v41 = vpack.c.bf16 %v467_v40, %v466_v39 }
 0x846   : > { %4248 = vrcp.f32 %v1181_v42 }
 0x848   : > { %v4188_v43 = vpop.permute.xlu1 %4187 }
 0x849   : > { %v4190_v44 = vunpack.i.h.bf16 %v4188_v43  ;;  %v4189_v45 = vunpack.i.l.bf16 %v4188_v43 }
 0x84b   : > { %v4004_v46 = vpack.c.bf16 %v4190_v44, %v4189_v45 }
 0x84c   : > { %v4193_v48 = vpop.permute.xlu1 %4192 }
 0x84d   : > { %v4195_v49 = vunpack.i.h.bf16 %v4193_v48  ;;  %v4194_v50 = vunpack.i.l.bf16 %v4193_v48  ;;  %4006 = vmatpush3.bf16.xpose.msk.msra.mxu0 %vm4607_vm4, %v4004_v46  ;;  %v3428_v46 = vld [vmem:[%s5125_s9] ss:$0 sm:$0xff] }
 0x84e   : > { %4007 = vmatprep.subr.bf16.mxu0 %v4340_v2 }
 0x84f   : > { %v4247_v47 = vpop.eup %4246  ;;  %v4012_v51 = vpack.c.bf16 %v4195_v49, %v4194_v50  ;;  %v3429_v49 = vld [vmem:[%s5126_s10] ss:$0 sm:$0xff] }
 0x850   : > { %3779 = vmatmul.mubr.msk.f32.vlgmr.msra.gmra.mrb[18].mxu1 %vm593_vm3, %v4247_v47  ;;  %v4198_v52 = vpop.permute.xlu1 %4197  ;;  %v1434_v53 = vsel %vm593_vm3, %v4247_v47, 0.0  ;;  %v4249_v58 = vpop.eup %4248 }
 0x851   : > { %v4200_v54 = vunpack.i.h.bf16 %v4198_v52  ;;  %v4199_v56 = vunpack.i.l.bf16 %v4198_v52  ;;  %1435 = vadd.xlane.f32.xlu0 %v1434_v53  ;;  %4014 = vmatpush3.bf16.xpose.msk.msra.mxu1 %vm4607_vm4, %v4012_v51  ;;  %v1259_v59 = vmul.f32 %v4249_v58, %v1254_v33  ;;  %v462_v33 = vld [vmem:[%s5121_s5 + $0x38] sm:$0xff]  ;;  %v3430_v51 = vld [vmem:[%s5122_s6] ss:$0 sm:$0xff] }
 0x852   : > { %4015 = vmatprep.subr.bf16.mxu1 %v4340_v2  ;;  %3789 = vmatprep.mubr.msk.f32.mxu1 %vm4341_vm2, %v4342_v5  ;;  %v4032_v34 = vpack.c.bf16 %v462_v33, %v461_v32 }
 0x853   : > { %v4008_v57 = vpack.c.bf16 %v4200_v54, %v4199_v56 }
 0x854   : > { %v4203_v60 = vpop.permute.xlu1 %4202 }
 0x855   : > { %4010 = vmatpush3.bf16.xpose.msk.msra.mxu0 %vm4607_vm4, %v4008_v57  ;;  %v4205_v61 = vunpack.i.h.bf16 %v4203_v60  ;;  %v4204_v62 = vunpack.i.l.bf16 %v4203_v60  ;;  %v3440_v57 = vld [vmem:[%s5124_s8] ss:$0 sm:$0xff] }
 0x856   : > { %4019 = vmatprep.subr.bf16.mxu0 %v4340_v2 }
 0x857   : > { %v4016_v63 = vpack.c.bf16 %v4205_v61, %v4204_v62 }
 0x859   : > { %4018 = vmatpush3.bf16.xpose.msk.msra.mxu1 %vm4607_vm4, %v4016_v63  ;;  %v3448_v63 = vld [vmem:[%s5149_s1 + $0x60] sm:$0xff] }
 0x85a   : > { %4035 = vmatprep.subr.bf16.mxu1 %v4340_v2 }
 0x85c   : > { %3769 = vmatmul.mubr.msk.f32.vlgmr.msra.gmra.mrb[2].mxu0 %vm593_vm3, %v1259_v59 }
 0x85d   : > { %3808 = vmatprep.mubr.msk.f32.mxu0 %vm4341_vm2, %v4342_v5 }
 0x8de   : > { %v1436_v0 = vpop.xlane.xlu0 %1435 }
 0x8df   : > { %4250 = vrcp.f32 %v1436_v0  ;;  %v3449_v0 = vld [vmem:[%s5149_s1 + $0x68] sm:$0xff] }
 0x8e9   : > { %v4251_v1 = vpop.eup %4250 }
 0x923   : > { %v1509_v3 = vpop.f32.mrb[18].mxu1 }
 0x924   : > { %v1514_v6 = vmul.f32 %v4251_v1, %v1509_v3  ;;  %v3780_v7 = vpop.f32.mrb[19].mxu1  ;;  %v4044_v1 = vpack.c.bf16 %v3449_v0, %v3448_v63  ;;  %v3450_v3 = vld [vmem:[%s5149_s1 + $0x70] sm:$0xff] }
 0x926   : > { %3790 = vmatmul.mubr.msk.f32.vlgmr.msra.gmra.mrb[20].mxu1 %vm593_vm3, %v1514_v6  ;;  %v3451_v6 = vld [vmem:[%s5149_s1 + $0x78] sm:$0xff] }
 0x927   : > { %3819 = vmatprep.mubr.msk.f32.mxu1 %vm4341_vm2, %v4342_v5  ;;  %4038 = vmatpush3.bf16.xpose.msk.msra.mxu1 %vm4748_vm6, %v4036_v37  ;;  %v4048_v7 = vpack.c.bf16 %v3451_v6, %v3450_v3 }
 0x928   : > { %4039 = vmatprep.subr.bf16.mxu1 %v4340_v2 }
 0x92f   : > { %v1345_v8 = vpop.f32.mrb[2].mxu0  ;;  %4042 = vmatpush3.bf16.xpose.msk.msra.mxu1 %vm4748_vm6, %v4040_v41 }
 0x930   : > { %v1349_v9 = vadd.f32 %v1345_v8, %v4653_v20  ;;  %v3770_v10 = vpop.f32.mrb[3].mxu0  ;;  %v4020_v20 = vpack.c.bf16 %v456_v19, %v455_v18  ;;  %4043 = vmatprep.subr.bf16.mxu1 %v4340_v2  ;;  %v3452_v8 = vld [vmem:[%s5149_s1 + $0x80] sm:$0xff] }
 0x931   : > { %v3456_v19 = vld [vmem:[%s5149_s1 + $0xa0] sm:$0xff] }
 0x932   : > { %4022 = vmatpush3.bf16.xpose.msk.msra.mxu0 %vm4482_vm1, %v4020_v20  ;;  %v3457_v20 = vld [vmem:[%s5149_s1 + $0xa8] sm:$0xff] }
 0x933   : > { %4023 = vmatprep.subr.bf16.mxu0 %v4340_v2 }
 0x9f9   : > { %v1600_v12 = vpop.f32.mrb[20].mxu1 }
 0x9fa   : > { %v1604_v13 = vadd.f32 %v1600_v12, %v1349_v9  ;;  %v3791_v14 = vpop.f32.mrb[21].mxu1  ;;  %v3453_v9 = vld [vmem:[%s5149_s1 + $0x88] sm:$0xff]  ;;  %v3455_v12 = vld [vmem:[%s5149_s1 + $0x98] sm:$0xff] }
 0x9fb   : > { %v4052_v10 = vpack.c.bf16 %v3453_v9, %v3452_v8 }
 0x9fc   : > { %v1611_v15 = vadd.f32 %v3427_v11, %v1604_v13  ;;  %v3454_v11 = vld [vmem:[%s5149_s1 + $0x90] sm:$0xff] }
 0x9fd   : > { %v4056_v13 = vpack.c.bf16 %v3455_v12, %v3454_v11 }
 0x9fe   : > { %v1612_v16 = vadd.f32 %v1611_v15, %v4544_v21  ;;  %v457_v21 = vld [vmem:[%s5121_s5 + $0x10] sm:$0xff] }
 0x9ff   : > { %v4024_v23 = vpack.c.bf16 %v458_v22, %v457_v21  ;;  %v4060_v21 = vpack.c.bf16 %v3457_v20, %v3456_v19  ;;  %v3458_v22 = vld [vmem:[%s5149_s1 + $0xb0] sm:$0xff] }
 0xa00   : > { %v1613_v17 = vsel %vm479_vm0, %v1612_v16, 0.0 }
 0xa01   : > { %1614 = vadd.xlane.f32.xlu0 %v1613_v17  ;;  %4026 = vmatpush3.bf16.xpose.msk.msra.mxu0 %vm4482_vm1, %v4024_v23  ;;  %v3459_v23 = vld [vmem:[%s5149_s1 + $0xb8] sm:$0xff] }
 0xa02   : > { %4027 = vmatprep.subr.bf16.mxu0 %v4340_v2 }
 0xa09   : > { %4030 = vmatpush3.bf16.xpose.msk.msra.mxu0 %vm4482_vm1, %v4028_v31  ;;  %v3447_v31 = vld [vmem:[%s5128_s12] ss:$0 sm:$0xff] }
 0xa0a   : > { %4031 = vmatprep.subr.bf16.mxu0 %v4340_v2 }
 0xa11   : > { %4034 = vmatpush3.bf16.xpose.msk.msra.mxu0 %vm4482_vm1, %v4032_v34  ;;  %v3484_v34 = vld [vmem:[%s5153_s2 + $0x1] ss:$0 sm:$0xff] }
 0xa12   : > { %3849 = vmatprep.subr.mxu0 %v4342_v5 }
 0xa8e   : > { %v1615_v24 = vpop.xlane.xlu0 %1614 }
 0xa8f   : > { %v1617_v25 = vmul.f32 0.03125, %v1615_v24  ;;  %v4064_v24 = vpack.c.bf16 %v3459_v23, %v3458_v22 }
 0xa91   : > { %v1618_v26 = vsub.f32 %v1612_v16, %v1617_v25 }
 0xa93   : > { %v1619_v27 = vmul.f32 %v1618_v26, %v1618_v26 }
 0xa95   : > { %v1620_v28 = vsel %vm479_vm0, %v1619_v27, 0.0 }
 0xa96   : > { %1621 = vadd.xlane.f32.xlu1 %v1620_v28 }
 0xb23   : > { %v1622_v42 = vpop.xlane.xlu1 %1621 }
 0xb24   : > { %v1623_v43 = vmul.f32 0.03125, %v1622_v42 }
 0xb26   : > { %v1624_v44 = vadd.f32 1e-05, %v1623_v43 }
 0xb28   : > { %4252 = vrsqrt.f32 %v1624_v44 }
 0xb32   : > { %v4253_v45 = vpop.eup %4252 }
 0xb33   : > { %v1626_v48 = vmul.f32 %v4253_v45, %v1618_v26 }
 0xb35   : > { %v1633_v50 = vmul.f32 %v3428_v46, %v1626_v48 }
 0xb37   : > { %v1640_v47 = vadd.f32 %v3429_v49, %v1633_v50 }
 0xb39   : > { %3809 = vmatmul.mubr.msk.f32.vlgmr.msra.gmra.mrb[4].mxu0 %vm479_vm0, %v1640_v47 }
 0xb3a   : > { %3851 = vmatprep.mubr.msk.f32.mxu0 %vm4341_vm2, %v4342_v5 }
 0xc0c   : > { %v1740_v52 = vpop.f32.mrb[4].mxu0 }
 0xc0d   : > { %v1741_v53 = vadd.f32 %v3430_v51, %v1740_v52  ;;  %v3810_v54 = vpop.f32.mrb[5].mxu0 }
 0xc0f   : > { %v1744_v56 = vmax.f32 %v1741_v53, 0.0 }
 0xc11   : > { %3820 = vmatmul.mubr.msk.f32.vlgmr.msra.gmra.mrb[22].mxu1 %vm1751_vm5, %v1744_v56 }
 0xc12   : > { %3846 = vmatprep.mubr.msk.f32.mxu1 %vm4341_vm2, %v4342_v5  ;;  %4046 = vmatpush3.bf16.xpose.msk.msra.mxu1 %vm4482_vm1, %v4044_v1 }
 0xc13   : > { %4047 = vmatprep.subr.bf16.mxu1 %v4340_v2 }
 0xc1a   : > { %4050 = vmatpush3.bf16.xpose.msk.msra.mxu1 %vm4482_vm1, %v4048_v7 }
 0xc1b   : > { %4051 = vmatprep.subr.bf16.mxu1 %v4340_v2 }
 0xc22   : > { %4054 = vmatpush3.bf16.xpose.msk.msra.mxu1 %vm4482_vm1, %v4052_v10 }
 0xc23   : > { %4055 = vmatprep.subr.bf16.mxu1 %v4340_v2 }
 0xc2a   : > { %4058 = vmatpush3.bf16.xpose.msk.msra.mxu1 %vm4482_vm1, %v4056_v13 }
 0xc2b   : > { %4059 = vmatprep.subr.bf16.mxu1 %v4340_v2 }
 0xc32   : > { %4062 = vmatpush3.bf16.xpose.msk.msra.mxu1 %vm4482_vm1, %v4060_v21 }
 0xc33   : > { %4063 = vmatprep.subr.bf16.mxu1 %v4340_v2 }
 0xc3a   : > { %4066 = vmatpush3.bf16.xpose.msk.msra.mxu1 %vm4482_vm1, %v4064_v24 }
 0xc3b   : > { %3891 = vmatprep.subr.mxu1 %v4342_v5 }
 0xce4   : > { %v1833_v58 = vpop.f32.mrb[22].mxu1 }
 0xce5   : > { %v1834_v59 = vadd.f32 %v3440_v57, %v1833_v58  ;;  %v3821_v60 = vpop.f32.mrb[23].mxu1 }
 0xce7   : > { %v1837_v61 = vadd.f32 %v1834_v59, %v1640_v47 }
 0xce9   : > { %v1838_v62 = vsel %vm479_vm0, %v1837_v61, 0.0 }
 0xcea   : > { %1839 = vadd.xlane.f32.xlu0 %v1838_v62 }
 0xd77   : > { %v1840_v14 = vpop.xlane.xlu0 %1839 }
 0xd78   : > { %v1841_v15 = vmul.f32 0.03125, %v1840_v14  ;;  %v4914_v14 = vld [vmem:[%s5119_s3 + $0x20] sm:$0xff] }
 0xd7a   : > { %v1842_v16 = vsub.f32 %v1837_v61, %v1841_v15  ;;  %v4919_v15 = vld [vmem:[%s5119_s3 + $0x28] sm:$0xff] }
 0xd7c   : > { %v1843_v17 = vmul.f32 %v1842_v16, %v1842_v16 }
 0xd7e   : > { %v1844_v18 = vsel %vm479_vm0, %v1843_v17, 0.0 }
 0xd7f   : > { %1845 = vadd.xlane.f32.xlu0 %v1844_v18 }
 0xe0c   : > { %v1846_v25 = vpop.xlane.xlu0 %1845 }
 0xe0d   : > { %v1847_v26 = vmul.f32 0.03125, %v1846_v25 }
 0xe0f   : > { %v1848_v27 = vadd.f32 1e-05, %v1847_v26 }
 0xe11   : > { %4254 = vrsqrt.f32 %v1848_v27 }
 0xe1b   : > { %v4255_v28 = vpop.eup %4254 }
 0xe1c   : > { %v1850_v30 = vmul.f32 %v4255_v28, %v1842_v16  ;;  %v4206_v16 = vpack.i.bf16 %v4919_v15, %v4914_v14 }
 0xe1e   : > { %v1857_v32 = vmul.f32 %v3446_v29, %v1850_v30 }
 0xe20   : > { %v4844_v33 = vadd.f32 %v3447_v31, %v1857_v32 }
 0xe22   : > { %3847 = vmatmul.mubr.msk.f32.vlgmr.msra.gmra.mrb[24].mxu1 %vm479_vm0, %v4844_v33 }
 0xe23   : > { %3893 = vmatprep.mubr.msk.f32.mxu1 %vm4341_vm2, %v4342_v5 }
 0xef5   : > { %v2024_v35 = vpop.f32.mrb[24].mxu1 }
 0xef6   : > { %v4853_v36 = vadd.f32 %v3484_v34, %v2024_v35  ;;  %v3848_v37 = vpop.f32.mrb[25].mxu1  ;;  %v3463_v34 = vld [vmem:[%s5119_s3 + $0x30] sm:$0xff]  ;;  %v3464_v35 = vld [vmem:[%s5119_s3 + $0x38] sm:$0xff] }
 0xef8   : > { %2030 = vrot.lane.b32.xlu0 %v4853_v36, %s4344_s17  ;;  %v2028_v39 = vmul.f32 0.35355338, %v4853_v36  ;;  %s5163_s17 = smov 56  }
 0xefa   : > { %2533 = vrot.lane.b32.xlu1 %v2028_v39, %s5158_s16 }
 0xefc   : > { %2535 = vrot.lane.b32.xlu0 %v4853_v36, %s5159_s21 }
 0xefe   : > { %2116 = vrot.lane.b32.xlu1 %v4853_v36, %s5160_s20  ;;  %s429_s20 = sand.u32 1, %s4330_s26  }
 0xf02   : > { %2196 = vrot.lane.b32.xlu1 %v4853_v36, %s5161_s24  ;;  %s3379_s24 = sshll.u32 %s429_s20, 3 }
 0xf06   : > { %2194 = vrot.lane.b32.xlu1 %v2028_v39, %s5162_s22 }
 0xf6a   : > { %v2031_v40 = vpop.permute.xlu0 %2030 }
 0xf6b   : > { %3850 = vmatpush3.xpose.msk.msra.mxu0 %vm593_vm3, %v2031_v40 }
 0xf6c   : > { %v2534_v41 = vpop.permute.xlu1 %2533  ;;  %3854 = vmatprep.subr.mxu0 %v4342_v5 }
 0xf6e   : > { %v2536_v42 = vpop.permute.xlu0 %2535  ;;  %3852 = vmatmul.mubr.msk.f32.vlgmr.msra.gmra.mrb[6].mxu0 %vm593_vm3, %v2028_v39 }
 0xf6f   : > { %3892 = vmatpush3.xpose.msk.msra.mxu1 %vm593_vm3, %v2536_v42  ;;  %3856 = vmatprep.mubr.msk.f32.mxu0 %vm4341_vm2, %v4342_v5 }
 0xf70   : > { %v2117_v43 = vpop.permute.xlu1 %2116  ;;  %3896 = vmatprep.subr.mxu1 %v4342_v5 }
 0xf71   : > { %3855 = vmatpush3.msra.mxu0 %v2117_v43 }
 0xf72   : > { %3894 = vmatmul.mubr.msk.f32.vlgmr.msra.gmra.mrb[26].mxu1 %vm593_vm3, %v2534_v41  ;;  %3859 = vmatprep.subr.mxu0 %v4342_v5 }
 0xf73   : > { %3898 = vmatprep.mubr.msk.f32.mxu1 %vm4341_vm2, %v4342_v5 }
 0xf74   : > { %v2197_v47 = vpop.permute.xlu1 %2196 }
 0xf78   : > { %v2195_v51 = vpop.permute.xlu1 %2194 }
0x1041   : > { %v2103_v44 = vpop.f32.mrb[6].mxu0 }
0x1042   : > { %v3853_v45 = vpop.f32.mrb[7].mxu0  ;;  %v2107_v46 = vsel %vm593_vm3, %v2103_v44, -inf }
0x1043   : > { %2108 = vmax.xlane.f32.xlu0 %v2107_v46 }
0x1045   : > { %v2607_v48 = vpop.f32.mrb[26].mxu1 }
0x1046   : > { %v3895_v49 = vpop.f32.mrb[27].mxu1  ;;  %v2611_v50 = vsel %vm593_vm3, %v2607_v48, -inf }
0x1047   : > { %2612 = vmax.xlane.f32.xlu1 %v2611_v50 }
0x1058   : > { %2281 = vrot.lane.b32.xlu1 %v4853_v36, %s5163_s17 }
0x1059   : > { %2620 = vrot.lane.b32.xlu0 %v4853_v36, %s5164_s15  ;;  %s5167_s15 = smov 40  }
0x105d   : > { %2790 = vrot.lane.b32.xlu0 %v4853_v36, %s5165_s30  ;;  %s431_s30 = scalar_lea.vmem [#allocation2], %s3379_s24 }
0x105e   : > { %s3316_s21 = sshll.u32 %s431_s30, 4  ;;  %s5075_s21 = int_to_ptr.vmem [resolvable:$true] %s3316_s21 }
0x1061   : > { %2788 = vrot.lane.b32.xlu0 %v2028_v39, %s5166_s23 }
0x10d0   : > { %v2109_v52 = vpop.xlane.xlu0 %2108 }
0x10d1   : > { %v2110_v53 = vsub.f32 %v2103_v44, %v2109_v52 }
0x10d3   : > { %v2111_v54 = vmul.f32 1.442695, %v2110_v53 }
0x10d4   : > { %v2613_v56 = vpop.xlane.xlu1 %2612  ;;  %v2621_v57 = vpop.permute.xlu0 %2620 }
0x10d5   : > { %4256 = vpow2.f32 %v2111_v54  ;;  %v2614_v58 = vsub.f32 %v2607_v48, %v2613_v56  ;;  %3897 = vmatpush3.msra.mxu1 %v2621_v57 }
0x10d6   : > { %3912 = vmatprep.subr.mxu1 %v4342_v5 }
0x10d7   : > { %v2615_v59 = vmul.f32 1.442695, %v2614_v58 }
0x10d8   : > { %v2791_v61 = vpop.permute.xlu0 %2790  ;;  %v2282_v63 = vpop.permute.xlu1 %2281 }
0x10d9   : > { %4258 = vpow2.f32 %v2615_v59 }
0x10dc   : > { %v2789_v0 = vpop.permute.xlu0 %2788 }
0x10df   : > { %v4257_v60 = vpop.eup %4256 }
0x10e0   : > { %3857 = vmatmul.mubr.msk.f32.vlgmr.msra.gmra.mrb[8].mxu0 %vm593_vm3, %v4257_v60  ;;  %v2113_v17 = vsel %vm593_vm3, %v4257_v60, 0.0 }
0x10e1   : > { %3860 = vmatpush3.xpose.msk.msra.mxu0 %vm593_vm3, %v2197_v47  ;;  %3861 = vmatprep.mubr.msk.f32.mxu0 %vm4341_vm2, %v4342_v5 }
0x10e2   : > { %3864 = vmatprep.subr.mxu0 %v4342_v5 }
0x10e3   : > { %v4892_v62 = vpop.eup %4258 }
0x10e4   : > { %3862 = vmatmul.mubr.msk.f32.vlgmr.msra.gmra.mrb[10].mxu0 %vm593_vm3, %v2195_v51  ;;  %3899 = vmatmul.mubr.msk.f32.vlgmr.msra.gmra.mrb[28].mxu1 %vm593_vm3, %v4892_v62  ;;  %v2617_v46 = vsel %vm593_vm3, %v4892_v62, 0.0 }
0x10e5   : > { %3865 = vmatpush3.msra.mxu0 %v2282_v63  ;;  %3913 = vmatpush3.xpose.msk.msra.mxu1 %vm593_vm3, %v2791_v61  ;;  %v4076_v61 = vpack.c.bf16 %v4919_v15, %v4914_v14 }
0x10e6   : > { %3914 = vmatprep.mubr.msk.f32.mxu1 %vm4341_vm2, %v4342_v5  ;;  %3917 = vmatprep.subr.mxu1 %v4342_v5 }
0x10e7   : > { %3866 = vmatprep.mubr.msk.f32.mxu0 %vm4341_vm2, %v4342_v5  ;;  %4067 = vmatprep.subr.bf16.mxu0 %v4340_v2 }
0x10e8   : > { %3915 = vmatmul.mubr.msk.f32.vlgmr.msra.gmra.mrb[30].mxu1 %vm593_vm3, %v2789_v0 }
0x10e9   : > { %3919 = vmatprep.mubr.msk.f32.mxu1 %vm4341_vm2, %v4342_v5 }
0x11b3   : > { %v2188_v1 = vpop.f32.mrb[8].mxu0 }
0x11b4   : > { %v3858_v3 = vpop.f32.mrb[9].mxu0 }
0x11b7   : > { %v2268_v6 = vpop.f32.mrb[10].mxu0  ;;  %v4907_v7 = vpop.f32.mrb[28].mxu1 }
0x11b8   : > { %v3863_v8 = vpop.f32.mrb[11].mxu0  ;;  %v3900_v9 = vpop.f32.mrb[29].mxu1  ;;  %v2272_v10 = vsel %vm593_vm3, %v2268_v6, -inf }
0x11b9   : > { %2273 = vmax.xlane.f32.xlu0 %v2272_v10  ;;  %v4080_v8 = vpack.c.bf16 %v3464_v35, %v3463_v34 }
0x11bb   : > { %v2862_v11 = vpop.f32.mrb[30].mxu1 }
0x11bc   : > { %v3916_v12 = vpop.f32.mrb[31].mxu1  ;;  %v2866_v13 = vsel %vm593_vm3, %v2862_v11, -inf }
0x11bd   : > { %2867 = vmax.xlane.f32.xlu1 %v2866_v13 }
0x11ce   : > { %4207 = vrot.lane.b32.xlu1 %v4206_v16, %s5162_s22 }
0x11cf   : > { %2875 = vrot.lane.b32.xlu0 %v4853_v36, %s5167_s15  ;;  %v4226_v36 = vpack.i.bf16 %v3464_v35, %v3463_v34  ;;  %v3469_v34 = vld [vmem:[%s5121_s5 + $0x58] sm:$0xff]  ;;  %s3552_s15 = sshll.u32 %s4446_s29, 7  ;;  %s4354_s29 = smov [#allocation2]  }
0x11d0   : > { %s5073_s2 = scalar_lea.hbm %s5129_s13, %s3552_s15  ;;  %s4280_s24 = sshll.u32 %s4354_s29, 4  ;;  %s4281_s24 = int_to_ptr.vmem [resolvable:$false] %s4280_s24 }
0x11d1   : > { %p4283_p0 = scmp.lt.s32.totalorder %s5075_s21, %s4281_s24 }
0x11f2   : > { %2114 = vadd.xlane.f32.xlu1 %v2113_v17 }
0x1203   : > { %4217 = vrot.lane.b32.xlu1 %v4206_v16, %s5158_s16 }
0x1207   : > { %4222 = vrot.lane.b32.xlu1 %v4206_v16, %s5166_s23 }
0x1246   : > { %v2274_v18 = vpop.xlane.xlu0 %2273 }
0x1247   : > { %v2275_v19 = vsub.f32 %v2268_v6, %v2274_v18 }
0x1249   : > { %v2276_v20 = vmul.f32 1.442695, %v2275_v19 }
0x124a   : > { %v2868_v21 = vpop.xlane.xlu1 %2867  ;;  %v2876_v22 = vpop.permute.xlu0 %2875 }
0x124b   : > { %4260 = vpow2.f32 %v2276_v20  ;;  %v2869_v23 = vsub.f32 %v2862_v11, %v2868_v21  ;;  %3918 = vmatpush3.msra.mxu1 %v2876_v22 }
0x124c   : > { %4091 = vmatprep.subr.bf16.mxu1 %v4340_v2 }
0x124d   : > { %v2870_v24 = vmul.f32 1.442695, %v2869_v23 }
0x124e   : > { %v4208_v25 = vpop.permute.xlu1 %4207 }
0x124f   : > { %4262 = vpow2.f32 %v2870_v24  ;;  %v4210_v26 = vunpack.i.h.bf16 %v4208_v25  ;;  %v4209_v27 = vunpack.i.l.bf16 %v4208_v25 }
0x1251   : > { %v4068_v28 = vpack.c.bf16 %v4210_v26, %v4209_v27  ;;  %v3530_v27 = vld [vmem:[%s5120_s4 + $0x1] ss:$0 sm:$0xff] }
0x1255   : > { %v4261_v29 = vpop.eup %4260 }
0x1256   : > { %3867 = vmatmul.mubr.msk.f32.vlgmr.msra.gmra.mrb[12].mxu0 %vm593_vm3, %v4261_v29  ;;  %v2278_v30 = vsel %vm593_vm3, %v4261_v29, 0.0 }
0x1257   : > { %2279 = vadd.xlane.f32.xlu0 %v2278_v30  ;;  %4070 = vmatpush3.bf16.xpose.msk.msra.mxu0 %vm4607_vm4, %v4068_v28  ;;  %v3466_v30 = vld [vmem:[%s5121_s5 + $0x40] sm:$0xff] }
0x1258   : > { %4071 = vmatprep.subr.bf16.mxu0 %v4340_v2  ;;  %3877 = vmatprep.mubr.msk.f32.mxu0 %vm4341_vm2, %v4342_v5 }
0x1259   : > { %v4263_v31 = vpop.eup %4262 }
0x125a   : > { %3920 = vmatmul.mubr.msk.f32.vlgmr.msra.gmra.mrb[32].mxu1 %vm593_vm3, %v4263_v31  ;;  %v2872_v32 = vsel %vm593_vm3, %v4263_v31, 0.0  ;;  %v3467_v31 = vld [vmem:[%s5121_s5 + $0x48] sm:$0xff] }
0x125b   : > { %2873 = vadd.xlane.f32.xlu1 %v2872_v32  ;;  %3930 = vmatprep.mubr.msk.f32.mxu1 %vm4341_vm2, %v4342_v5  ;;  %v4100_v32 = vpack.c.bf16 %v3467_v31, %v3466_v30 }
0x126c   : > { %4227 = vrot.lane.b32.xlu1 %v4226_v36, %s5158_s16  ;;  %s3303_s16 = scalar_lea.sflag [#allocation3], %s429_s20 }
0x126d   : > { %4212 = vrot.lane.b32.xlu0 %v4226_v36, %s5162_s22  ;;  %s4276_s22 = scalar_lea.vmem %s5075_s21, 128 }
0x126e   : > { %p4277_p11 = scmp.ne.s32.totalorder %s5075_s21, %s4276_s22 }
0x1270   : > { %p4278_p12 = pnand %p4277_p11, %p4463_p5 }
0x1272   : > { %p4279_p13 = pneg %p4278_p12 }
0x127f   : > { %v2115_v37 = vpop.xlane.xlu1 %2114 }
0x1280   : > { %4264 = vrcp.f32 %v2115_v37 }
0x1283   : > { %v4218_v39 = vpop.permute.xlu1 %4217 }
0x1284   : > { %v4220_v9 = vunpack.i.h.bf16 %v4218_v39  ;;  %v4219_v10 = vunpack.i.l.bf16 %v4218_v39 }
0x1286   : > { %v4084_v12 = vpack.c.bf16 %v4220_v9, %v4219_v10 }
0x1287   : > { %v4223_v40 = vpop.permute.xlu1 %4222 }
0x1288   : > { %v4225_v41 = vunpack.i.h.bf16 %v4223_v40  ;;  %v4224_v42 = vunpack.i.l.bf16 %v4223_v40 }
0x128a   : > { %v4265_v43 = vpop.eup %4264  ;;  %v4092_v44 = vpack.c.bf16 %v4225_v41, %v4224_v42  ;;  %v3470_v42 = vld [vmem:[%s5121_s5 + $0x60] sm:$0xff] }
0x128b   : > { %v2193_v45 = vmul.f32 %v4265_v43, %v2188_v1  ;;  %v3471_v43 = vld [vmem:[%s5121_s5 + $0x68] sm:$0xff] }
0x128c   : > { %2618 = vadd.xlane.f32.xlu0 %v2617_v46  ;;  %4094 = vmatpush3.bf16.xpose.msk.msra.mxu1 %vm4607_vm4, %v4092_v44  ;;  %v4108_v44 = vpack.c.bf16 %v3471_v43, %v3470_v42  ;;  %v3473_v46 = vld [vmem:[%s5121_s5 + $0x78] sm:$0xff] }
0x128d   : > { %4095 = vmatprep.subr.bf16.mxu1 %v4340_v2 }
0x12a2   : > { %4232 = vrot.lane.b32.xlu0 %v4226_v36, %s5166_s23  ;;  %s4282_s23 = scalar_lea.vmem %s4281_s24, 256 }
0x12a3   : > { %p4284_p1 = scmp.lt.s32.totalorder %s4282_s23, %s4276_s22 }
0x12a5   : > { %p4285_p2 = por %p4284_p1, %p4283_p0 }
0x12a7   : > { %p4286_p3 = pnand %p4285_p2, %p4279_p13 }
0x12e4   : > { %v2280_v48 = vpop.xlane.xlu0 %2279 }
0x12e5   : > { %4266 = vrcp.f32 %v2280_v48 }
0x12e8   : > { %v4213_v49 = vpop.permute.xlu0 %4212  ;;  %v2874_v57 = vpop.xlane.xlu1 %2873 }
0x12e9   : > { %v4215_v50 = vunpack.i.h.bf16 %v4213_v49  ;;  %v4214_v47 = vunpack.i.l.bf16 %v4213_v49  ;;  %4268 = vrcp.f32 %v2874_v57  ;;  %v3475_v49 = vld [vmem:[%s5123_s7 + $0x20] sm:$0xff] }
0x12eb   : > { %v4072_v51 = vpack.c.bf16 %v4215_v50, %v4214_v47  ;;  %v3476_v50 = vld [vmem:[%s5123_s7 + $0x28] sm:$0xff] }
0x12ec   : > { %v4228_v11 = vpop.permute.xlu1 %4227  ;;  %v4116_v47 = vpack.c.bf16 %v3476_v50, %v3475_v49 }
0x12ed   : > { %4074 = vmatpush3.bf16.xpose.msk.msra.mxu0 %vm4607_vm4, %v4072_v51  ;;  %v4230_v13 = vunpack.i.h.bf16 %v4228_v11  ;;  %v4229_v14 = vunpack.i.l.bf16 %v4228_v11  ;;  %v3477_v51 = vld [vmem:[%s5123_s7 + $0x30] sm:$0xff] }
0x12ee   : > { %4075 = vmatprep.subr.bf16.mxu0 %v4340_v2 }
0x12ef   : > { %v4267_v59 = vpop.eup %4266  ;;  %v4088_v15 = vpack.c.bf16 %v4230_v13, %v4229_v14 }
0x12f3   : > { %v4269_v0 = vpop.eup %4268 }
0x1319   : > { %v2619_v52 = vpop.xlane.xlu0 %2618 }
0x131a   : > { %4270 = vrcp.f32 %v2619_v52  ;;  %v4120_v52 = vpack.c.bf16 %v3478_v4, %v3477_v51 }
0x131d   : > { %v4233_v53 = vpop.permute.xlu0 %4232 }
0x131e   : > { %v4235_v54 = vunpack.i.h.bf16 %v4233_v53  ;;  %v4234_v56 = vunpack.i.l.bf16 %v4233_v53 }
0x1320   : > { %v4096_v58 = vpack.c.bf16 %v4235_v54, %v4234_v56 }
0x1322   : > { %4098 = vmatpush3.bf16.xpose.msk.msra.mxu1 %vm4607_vm4, %v4096_v58 }
0x1323   : > { %4115 = vmatprep.subr.bf16.mxu1 %v4340_v2 }
0x1324   : > { %v4271_v16 = vpop.eup %4270 }
0x1325   : > { %v2697_v17 = vmul.f32 %v4271_v16, %v4907_v7 }
0x1329   : > { %v2353_v60 = vpop.f32.mrb[12].mxu0 }
0x132a   : > { %v2358_v62 = vmul.f32 %v4267_v59, %v2353_v60  ;;  %v3868_v63 = vpop.f32.mrb[13].mxu0  ;;  %v3532_v59 = vld [vmem:[%s5126_s10 + $0x1] ss:$0 sm:$0xff] }
0x132c   : > { %3878 = vmatmul.mubr.msk.f32.vlgmr.msra.gmra.mrb[14].mxu0 %vm593_vm3, %v2358_v62 }
0x132d   : > { %4078 = vmatpush3.bf16.xpose.msk.msra.mxu0 %vm4607_vm4, %v4076_v61  ;;  %v2947_v1 = vpop.f32.mrb[32].mxu1  ;;  %3888 = vmatprep.mubr.msk.f32.mxu0 %vm4341_vm2, %v4342_v5 }
0x132e   : > { %v2952_v3 = vmul.f32 %v4269_v0, %v2947_v1  ;;  %v3921_v6 = vpop.f32.mrb[33].mxu1  ;;  %4079 = vmatprep.subr.bf16.mxu0 %v4340_v2 }
0x1330   : > { %3931 = vmatmul.mubr.msk.f32.vlgmr.msra.gmra.mrb[34].mxu1 %vm593_vm3, %v2952_v3  ;;  %v3543_v3 = vld [vmem:[%s5124_s8 + $0x1] ss:$0 sm:$0xff] }
0x1331   : > { %3960 = vmatprep.mubr.msk.f32.mxu1 %vm4341_vm2, %v4342_v5  ;;  %4118 = vmatpush3.bf16.xpose.msk.msra.mxu1 %vm4748_vm6, %v4116_v47 }
0x1332   : > { %4119 = vmatprep.subr.bf16.mxu1 %v4340_v2 }
0x1335   : > { %4082 = vmatpush3.bf16.xpose.msk.msra.mxu0 %vm4607_vm4, %v4080_v8 }
0x1336   : > { %4083 = vmatprep.subr.bf16.mxu0 %v4340_v2 }
0x1339   : > { %4122 = vmatpush3.bf16.xpose.msk.msra.mxu1 %vm4748_vm6, %v4120_v52 }
0x133c   : > { %3889 = vmatmul.mubr.msk.f32.vlgmr.msra.gmra.mrb[16].mxu0 %vm593_vm3, %v2193_v45  ;;  %v3472_v45 = vld [vmem:[%s5121_s5 + $0x70] sm:$0xff] }
0x133d   : > { %4086 = vmatpush3.bf16.xpose.msk.msra.mxu0 %vm4607_vm4, %v4084_v12  ;;  %3909 = vmatprep.mubr.msk.f32.mxu0 %vm4341_vm2, %v4342_v5  ;;  %v4112_v48 = vpack.c.bf16 %v3473_v46, %v3472_v45 }
0x133e   : > { %4087 = vmatprep.subr.bf16.mxu0 %v4340_v2 }
0x1345   : > { %4090 = vmatpush3.bf16.xpose.msk.msra.mxu0 %vm4607_vm4, %v4088_v15 }
0x1346   : > { %4099 = vmatprep.subr.bf16.mxu0 %v4340_v2 }
0x134c   : > { %3910 = vmatmul.mubr.msk.f32.vlgmr.msra.gmra.mrb[18].mxu0 %vm593_vm3, %v2697_v17 }
0x134d   : > { %3949 = vmatprep.mubr.msk.f32.mxu0 %vm4341_vm2, %v4342_v5  ;;  %4102 = vmatpush3.bf16.xpose.msk.msra.mxu0 %vm4482_vm1, %v4100_v32 }
0x134e   : > { %4103 = vmatprep.subr.bf16.mxu0 %v4340_v2 }
0x13ff   : > { %v2448_v18 = vpop.f32.mrb[14].mxu0 }
0x1400   : > { %v3879_v19 = vpop.f32.mrb[15].mxu0 }
0x1403   : > { %v3038_v20 = vpop.f32.mrb[34].mxu1 }
0x1404   : > { %v3932_v21 = vpop.f32.mrb[35].mxu1 }
0x1405   : > { %v3549_v21 = vld [vmem:[%s5127_s11 + $0x1] ss:$0 sm:$0xff] }
0x140f   : > { %v2529_v22 = vpop.f32.mrb[16].mxu0 }
0x1410   : > { %v2530_v23 = vadd.f32 %v2529_v22, %v2448_v18  ;;  %v3890_v24 = vpop.f32.mrb[17].mxu0 }
0x141f   : > { %v2783_v25 = vpop.f32.mrb[18].mxu0 }
0x1420   : > { %v2787_v55 = vadd.f32 %v2783_v25, %v2530_v23  ;;  %v3911_v26 = vpop.f32.mrb[19].mxu0  ;;  %v3550_v23 = vld [vmem:[%s5128_s12 + $0x1] ss:$0 sm:$0xff] }
0x1422   : > { %v3042_v7 = vadd.f32 %v3038_v20, %v2787_v55 }
0x1424   : > { %v3049_v28 = vadd.f32 %v3530_v27, %v3042_v7 }
0x1426   : > { %v3050_v29 = vadd.f32 %v3049_v28, %v4844_v33  ;;  %v3468_v33 = vld [vmem:[%s5121_s5 + $0x50] sm:$0xff] }
0x1427   : > { %v4104_v35 = vpack.c.bf16 %v3469_v34, %v3468_v33 }
0x1428   : > { %v3051_v5 = vsel %vm479_vm0, %v3050_v29, 0.0 }
0x1429   : > { %3052 = vadd.xlane.f32.xlu1 %v3051_v5  ;;  %4106 = vmatpush3.bf16.xpose.msk.msra.mxu0 %vm4482_vm1, %v4104_v35 }
0x142a   : > { %4107 = vmatprep.subr.bf16.mxu0 %v4340_v2 }
0x1431   : > { %4110 = vmatpush3.bf16.xpose.msk.msra.mxu0 %vm4482_vm1, %v4108_v44 }
0x1432   : > { %4111 = vmatprep.subr.bf16.mxu0 %v4340_v2  ;;  %v3531_v2 = vld [vmem:[%s5125_s9 + $0x1] ss:$0 sm:$0xff] }
0x1439   : > { %4114 = vmatpush3.bf16.xpose.msk.msra.mxu0 %vm4482_vm1, %v4112_v48 }
0x14b6   : > { %v3053_v36 = vpop.xlane.xlu1 %3052 }
0x14b7   : > { %v3054_v37 = vmul.f32 0.03125, %v3053_v36 }
0x14b9   : > { %v3055_v39 = vsub.f32 %v3050_v29, %v3054_v37 }
0x14bb   : > { %v3056_v40 = vmul.f32 %v3055_v39, %v3055_v39 }
0x14bd   : > { %v3057_v41 = vsel %vm479_vm0, %v3056_v40, 0.0 }
0x14be   : > { %3058 = vadd.xlane.f32.xlu0 %v3057_v41 }
0x154b   : > { %v3059_v53 = vpop.xlane.xlu0 %3058 }
0x154c   : > { %v3060_v54 = vmul.f32 0.03125, %v3059_v53 }
0x154e   : > { %v3061_v56 = vadd.f32 1e-05, %v3060_v54 }
0x1550   : > { %4272 = vrsqrt.f32 %v3061_v56 }
0x155a   : > { %v4273_v57 = vpop.eup %4272 }
0x155b   : > { %v3063_v58 = vmul.f32 %v4273_v57, %v3055_v39 }
0x155d   : > { %v3070_v60 = vmul.f32 %v3531_v2, %v3063_v58 }
0x155f   : > { %v3077_v61 = vadd.f32 %v3532_v59, %v3070_v60 }
0x1561   : > { %3950 = vmatmul.mubr.msk.f32.vlgmr.msra.gmra.mrb[20].mxu0 %vm479_vm0, %v3077_v61 }
0x1634   : > { %v3177_v62 = vpop.f32.mrb[20].mxu0 }
0x1635   : > { %v3178_v63 = vadd.f32 %v3533_v38, %v3177_v62  ;;  %v3951_v0 = vpop.f32.mrb[21].mxu0 }
0x1637   : > { %v3181_v1 = vmax.f32 %v3178_v63, 0.0 }
0x1639   : > { %3961 = vmatmul.mubr.msk.f32.vlgmr.msra.gmra.mrb[36].mxu1 %vm1751_vm5, %v3181_v1 }
0x170c   : > { %v3269_v6 = vpop.f32.mrb[36].mxu1 }
0x170d   : > { %v3270_v8 = vadd.f32 %v3543_v3, %v3269_v6  ;;  %v3962_v9 = vpop.f32.mrb[37].mxu1 }
0x170f   : > { %v3273_v10 = vadd.f32 %v3270_v8, %v3077_v61 }
0x1711   : > { %v3274_v11 = vsel %vm479_vm0, %v3273_v10, 0.0 }
0x1712   : > { %3275 = vadd.xlane.f32.xlu1 %v3274_v11 }
0x179f   : > { %v3276_v12 = vpop.xlane.xlu1 %3275 }
0x17a0   : > { %v3277_v13 = vmul.f32 0.03125, %v3276_v12 }
0x17a2   : > { %v3278_v14 = vsub.f32 %v3273_v10, %v3277_v13 }
0x17a4   : > { %v3279_v15 = vmul.f32 %v3278_v14, %v3278_v14 }
0x17a6   : > { %v3280_v16 = vsel %vm479_vm0, %v3279_v15, 0.0 }
0x17a7   : > { %3281 = vadd.xlane.f32.xlu1 %v3280_v16 }
0x1834   : > { %v3282_v17 = vpop.xlane.xlu1 %3281 }
0x1835   : > { %v3283_v18 = vmul.f32 0.03125, %v3282_v17 }
0x1837   : > { %v3284_v19 = vadd.f32 1e-05, %v3283_v18 }
0x1839   : > { %4274 = vrsqrt.f32 %v3284_v19 }
0x1843   : > { %v4275_v20 = vpop.eup %4274 }
0x1844   : > { %v3286_v22 = vmul.f32 %v4275_v20, %v3278_v14 }
0x1846   : > { %v3293_v24 = vmul.f32 %v3549_v21, %v3286_v22 }
0x1848   : > { %v3300_v25 = vadd.f32 %v3550_v23, %v3293_v24 }
0x184a   : > { %3301 = vst.msk [vmem:[%s431_s30] sm:$0xff] %vm479_vm0, %v3300_v25 }
0x184b   : > { %4289 = shalt.err (!%p4286_p3)
}
0x184c   : > { %s4290_s0 = scalar_lea.hbm %s5073_s2, 128  ;;  %s4294_s17 = scalar_lea.hbm %s5129_s13, 256 }
0x184d   : > { %p4291_p4 = scmp.ne.s32.totalorder %s5073_s2, %s4290_s0  ;;  %p4295_p9 = scmp.lt.u32.totalorder %s5073_s2, %s5129_s13 }
0x184e   : > { %p4296_p10 = scmp.lt.u32.totalorder %s4294_s17, %s4290_s0  ;;  %p4298_p12 = scmp.lt.u32.totalorder %s4290_s0, %s5073_s2 }
0x184f   : > { %p4292_p7 = pnand %p4291_p4, %p4463_p5 }
0x1850   : > { %p4297_p11 = por %p4296_p10, %p4295_p9 }
0x1851   : > { %p4293_p8 = pneg %p4292_p7 }
0x1852   : > { %p4299_p13 = por %p4298_p12, %p4297_p11 }
0x1854   : > { %p4300_p0 = pnand %p4299_p13, %p4293_p8 }
0x1856   : > { %4303 = shalt.err (!%p4300_p0)
}
0x1857   : > { %4123 = dma.vmem_to_hbm [thread:$0]  (%p4463_p5), %s5075_s21, 128, %s5073_s2, %s3303_s16  }
0x1858 PF: > { %p4129_p1 = scmp.ge.s32.totalorder %s4338_s28, 2  ;;  %s3328_s22 = sand.u32 1, %s4326_s25  }
0x1859   : > { %s3329_s29 = scalar_lea.sflag [#allocation3], %s3328_s22 }
0x185a   : > { %p4126_p2 = pnand %p4129_p1, %p4467_p6 }
0x185c   : > { %4321 = dma.done.wait (!%p4126_p2), %s3329_s29, 128  }
0x185d   : > { %4323 = vsyncadd (!%p4126_p2), %s3329_s29, 4294967168  ;;  %s5168_s24 = sld [smem:[#allocation5_spill]]  ;;  %p23_p3 = scmp.ge.s32.totalorder %s4450_s14, 4  }
0x185e   : > { %s5169_s25 = smov %s4330_s26  ;;  %s5170_s26 = smov %s4334_s27 }
0x185f   : > { %s5172_s28 = smov %s4450_s14  ;;  %25 = sbr.rel (!%p23_p3) target bundleno = 7 (0x7), region = 119 }
0x1863   : > { %s5171_s27 = smov %s5168_s24 }
0x1866   :  { %3334 = vsyncpa [#allocation3], 1 }
0x1867   :  { %3336 = vsyncpa [#allocation3 + $0x1], 1 }

</bundles_post_ra>
